<compile_context>
chip_gen: v7x
topology: tpu7x:2x2x1
jax: 0.10.0
libtpu: 0.0.40
codegen_flags: <defaults>
</compile_context>

<pallas_src>
import functools
from typing import NamedTuple

import jax
import jax.numpy as jnp
from jax.experimental import pallas as pl
from jax.experimental.pallas import tpu as pltpu


# ----------------------------------------------------------------------------
# helpers
# ----------------------------------------------------------------------------
def _round_up(x, m):
    return ((x + m - 1) // m) * m


def _pick_tile(dim, cap, align):
    """Largest multiple of `align` that divides `dim` and is <= cap.
    Requires dim % align == 0 and dim >= align."""
    t = min(dim, max(cap, align))
    t = max((t // align) * align, align)
    while dim % t:
        t -= align
    return t


# Tile caps: 2*(tm*tk + tk*tn)*2B (dbl-buffered bf16 inputs) + tm*tn*4B acc
# + 2*tm*tn out buffers  <= ~8 MiB at the caps, safe on every generation.
_TM_CAP, _TN_CAP, _TK_CAP = 1024, 512, 512


@functools.lru_cache(maxsize=None)
def _vmem_limit_bytes():
    """v7x has 64 MiB physical VMEM per TensorCore; v5e/v6e have 128 MiB."""
    try:
        kind = jax.devices()[0].device_kind.lower()
    except Exception:
        kind = ""
    if "7" in kind:
        return 48 * 1024 * 1024
    return 96 * 1024 * 1024


class ConvCfg(NamedTuple):
    kh: int
    kw: int
    stride: int
    padding: int
    cin: int
    cout: int


# ----------------------------------------------------------------------------
# Pallas kernel: tiled MXU matmul + f32 accumulation + fused bias / LeakyReLU
# ----------------------------------------------------------------------------
def _matmul_bias_act_kernel(x_ref, w_ref, b_ref, o_ref, *scratch,
                            negative_slope):
    # f32 output: accumulate straight into the VMEM-resident output block
    # (its block index is independent of k).  bf16 output: use f32 scratch.
    acc_ref = scratch[0] if scratch else o_ref
    k = pl.program_id(2)

    @pl.when(k == 0)
    def _():
        acc_ref[...] = jnp.zeros_like(acc_ref)

    acc_ref[...] += jnp.dot(x_ref[...], w_ref[...],
                            preferred_element_type=jnp.float32)

    @pl.when(k == pl.num_programs(2) - 1)
    def _():
        acc = acc_ref[...] + b_ref[...]          # (1, tn) broadcast over rows
        if negative_slope is not None:
            acc = jnp.where(acc >= 0, acc, negative_slope * acc)
        o_ref[...] = acc.astype(o_ref.dtype)


def matmul_bias_act(x, w, b, *, negative_slope=None, out_dtype=jnp.float32):
    """x: (M, K) bf16;  w: (Kp, N) bf16 with Kp >= K;  b: (1, N) f32.
    Returns (M, N) out_dtype.  N is either a multiple of 128 (lane-dense
    stores) or used as a full unpadded last dim (narrow head convs)."""
    M, K = x.shape
    Kp, N = w.shape
    assert Kp >= K and b.shape == (1, N)

    # Single fused pad: sublane-align rows (16 for bf16 packing) and match
    # the pre-padded weight contraction dim in one copy.
    Mp = _round_up(M, 16)
    if Mp != M or Kp != K:
        x = jnp.pad(x, ((0, Mp - M), (0, Kp - K)))

    tm = _pick_tile(Mp, _TM_CAP, 16)
    tk = _pick_tile(Kp, _TK_CAP, 128) if Kp % 128 == 0 else Kp   # full-K tile
    tn = _pick_tile(N, _TN_CAP, 128) if N % 128 == 0 else N      # full-N tile

    # Guarantee >= 2 blocks along a "parallel" axis so v7x's two TensorCores
    # both get work (no-op on single-TC v5e/v6e).
    if Mp // tm == 1 and N // tn == 1 and Mp >= 32 and (Mp // 2) % 16 == 0:
        tm = Mp // 2

    grid = (Mp // tm, N // tn, Kp // tk)

    use_scratch = (jnp.dtype(out_dtype) != jnp.dtype(jnp.float32))
    scratch_shapes = [pltpu.VMEM((tm, tn), jnp.float32)] if use_scratch else []

    out_bytes = Mp * N * jnp.dtype(out_dtype).itemsize
    cost = pl.CostEstimate(
        flops=2 * Mp * N * Kp,
        transcendentals=0,
        bytes_accessed=Mp * Kp * 2 + Kp * N * 2 + N * 4 + out_bytes,
    )

    kernel = functools.partial(_matmul_bias_act_kernel,
                               negative_slope=negative_slope)

    out = pl.pallas_call(
        kernel,
        out_shape=jax.ShapeDtypeStruct((Mp, N), out_dtype),
        grid_spec=pltpu.PrefetchScalarGridSpec(
            num_scalar_prefetch=0,
            grid=grid,
            in_specs=[
                pl.BlockSpec((tm, tk), lambda i, j, k: (i, k)),
                pl.BlockSpec((tk, tn), lambda i, j, k: (k, j)),
                pl.BlockSpec((1, tn), lambda i, j, k: (0, j)),
            ],
            out_specs=pl.BlockSpec((tm, tn), lambda i, j, k: (i, j)),
            scratch_shapes=scratch_shapes,
        ),
        compiler_params=pltpu.CompilerParams(
            dimension_semantics=("parallel", "parallel", "arbitrary"),
            vmem_limit_bytes=_vmem_limit_bytes(),
        ),
        cost_estimate=cost,
    )(x, w, b)

    return out[:M] if Mp != M else out


# ----------------------------------------------------------------------------
# Conv2d = im2col (bf16, wrapper glue) + Pallas fused matmul
# ----------------------------------------------------------------------------
def conv2d_nhwc(x, cfg: ConvCfg, prm, *, negative_slope=None,
                out_dtype=jnp.float32):
    """x: (B, H, W, Cin) bf16 NHWC.  Returns (B, Ho, Wo, Cout) out_dtype."""
    w, b = prm["w"], prm["b"]
    B, H, W, Cin = x.shape
    assert Cin == cfg.cin                      # plain Python ints (static)
    KH, KW, s, p = cfg.kh, cfg.kw, cfg.stride, cfg.padding

    xp = jnp.pad(x, ((0, 0), (p, p), (p, p), (0, 0))) if p else x
    Ho = (H + 2 * p - KH) // s + 1
    Wo = (W + 2 * p - KW) // s + 1

    # im2col directly in bf16; (kh, kw, cin) ordering matches weight prep.
    # TODO(synk): build patch tiles inside the kernel (BlockSpec over padded
    # NHWC input by output-row tiles) to avoid this HBM-expanded intermediate
    # at production image sizes.
    patches = [xp[:, kh:kh + s * Ho:s, kw:kw + s * Wo:s, :]
               for kh in range(KH) for kw in range(KW)]
    pat = jnp.stack(patches, axis=3).reshape(B * Ho * Wo, KH * KW * Cin)
    pat = pat.astype(jnp.bfloat16)             # no-op when already bf16

    out = matmul_bias_act(pat, w, b, negative_slope=negative_slope,
                          out_dtype=out_dtype)
    if out.shape[1] != cfg.cout:               # strip lane padding (main convs)
        out = out[:, :cfg.cout]
    return out.reshape(B, Ho, Wo, cfg.cout)


# ----------------------------------------------------------------------------
# Discriminator parameters + forward
# ----------------------------------------------------------------------------
def _prep_conv_layer(w_oihw, bias, *, stride, padding, pad_cout):
    """Pre-transpose OIHW -> (K, Cout), optionally pad K/N, cast to bf16.
    Returns (static ConvCfg, array-only params dict)."""
    Cout, Cin, KH, KW = w_oihw.shape
    K = KH * KW * Cin
    # Pad the contraction dim to 128 only when it is both misaligned AND too
    # large for a single full-K tile (small K keeps its exact size -> no zero
    # DMA traffic; BlockSpec's full-dim exception covers alignment).
    Kp = K if (K % 128 == 0 or K <= _TK_CAP) else _round_up(K, 128)
    # Pad Cout to 128 only for the "main" convs (lane-dense output stores);
    # the narrow heads (Cout = 1 / c_dim) stay unpadded.
    Np = _round_up(Cout, 128) if pad_cout else Cout

    wm = jnp.transpose(w_oihw, (2, 3, 1, 0)).reshape(K, Cout)
    wm = jnp.pad(wm, ((0, Kp - K), (0, Np - Cout))).astype(jnp.bfloat16)
    bias_f = (jnp.zeros((Cout,), jnp.float32) if bias is None
              else bias.astype(jnp.float32))
    bp = jnp.pad(bias_f, (0, Np - Cout)).reshape(1, Np)

    cfg = ConvCfg(kh=KH, kw=KW, stride=stride, padding=padding,
                  cin=Cin, cout=Cout)
    prm = {"w": wm, "b": bp, "raw_w": w_oihw, "raw_b": bias_f}
    return cfg, prm


def init_discriminator(key, image_size=16, conv_dim=8, c_dim=5, repeat_num=2):
    cfgs = {"main": []}
    params = {"main": []}
    keys = jax.random.split(key, 2 * repeat_num + 2)
    ki = iter(range(2 * repeat_num + 2))

    def nk():
        return keys[next(ki)]

    # first conv: 3 -> conv_dim, k4 s2 p1 (with nonzero bias)
    w = 0.05 * jax.random.normal(nk(), (conv_dim, 3, 4, 4), jnp.float32)
    b = 0.02 * jax.random.normal(nk(), (conv_dim,), jnp.float32)
    cfg, prm = _prep_conv_layer(w, b, stride=2, padding=1, pad_cout=True)
    cfgs["main"].append(cfg)
    params["main"].append(prm)

    curr = conv_dim
    for _ in range(1, repeat_num):
        w = 0.05 * jax.random.normal(nk(), (curr * 2, curr, 4, 4), jnp.float32)
        b = 0.02 * jax.random.normal(nk(), (curr * 2,), jnp.float32)
        cfg, prm = _prep_conv_layer(w, b, stride=2, padding=1, pad_cout=True)
        cfgs["main"].append(cfg)
        params["main"].append(prm)
        curr *= 2

    k_last = image_size // (2 ** repeat_num)
    w1 = 0.05 * jax.random.normal(nk(), (1, curr, 3, 3), jnp.float32)
    w2 = 0.05 * jax.random.normal(nk(), (c_dim, curr, k_last, k_last),
                                  jnp.float32)
    cfgs["conv1"], params["conv1"] = _prep_conv_layer(
        w1, None, stride=1, padding=1, pad_cout=False)      # no bias
    cfgs["conv2"], params["conv2"] = _prep_conv_layer(
        w2, None, stride=1, padding=0, pad_cout=False)      # no bias

    cfgs["main"] = tuple(cfgs["main"])
    return cfgs, params


def make_discriminator_forward(cfgs):
    """cfgs (static Python metadata) is closed over; only arrays are traced."""

    def forward(params, x_nchw):
        h = jnp.transpose(x_nchw, (0, 2, 3, 1)).astype(jnp.bfloat16)  # NHWC
        # main: conv(k4,s2,p1) + LeakyReLU(0.01), bf16 intermediate outputs
        for cfg, prm in zip(cfgs["main"], params["main"]):
            h = conv2d_nhwc(h, cfg, prm, negative_slope=0.01,
                            out_dtype=jnp.bfloat16)
        # TODO(synk): conv1/conv2 share h and could be fused into a single
        # pallas_call with two outputs to halve h reads / launch overhead.
        out_src = conv2d_nhwc(h, cfgs["conv1"], params["conv1"],
                              out_dtype=jnp.float32)         # k3 s1 p1
        out_src = jnp.transpose(out_src, (0, 3, 1, 2))       # NCHW (B,1,Ho,Wo)
        out_cls = conv2d_nhwc(h, cfgs["conv2"], params["conv2"],
                              out_dtype=jnp.float32)         # full-spatial
        out_cls = out_cls.reshape(out_cls.shape[0], out_cls.shape[-1])
        return out_src, out_cls

    return forward


# ----------------------------------------------------------------------------
# pure-JAX reference (f32, lax conv) for correctness sanity check
# ----------------------------------------------------------------------------
def _ref_conv(x_nhwc, cfg, prm, negative_slope=None):
    w_hwio = jnp.transpose(prm["raw_w"], (2, 3, 1, 0))
    y = jax.lax.conv_general_dilated(
        x_nhwc, w_hwio,
        window_strides=(cfg.stride, cfg.stride),
        padding=[(cfg.padding, cfg.padding)] * 2,
        dimension_numbers=("NHWC", "HWIO", "NHWC"))
    y = y + prm["raw_b"]
    if negative_slope is not None:
        y = jnp.where(y >= 0, y, negative_slope * y)
    return y


def _ref_forward(cfgs, params, x_nchw):
    h = jnp.transpose(x_nchw, (0, 2, 3, 1))
    for cfg, prm in zip(cfgs["main"], params["main"]):
        h = _ref_conv(h, cfg, prm, negative_slope=0.01)
    out_src = jnp.transpose(_ref_conv(h, cfgs["conv1"], params["conv1"]),
                            (0, 3, 1, 2))
    out_cls = _ref_conv(h, cfgs["conv2"], params["conv2"])
    return out_src, out_cls.reshape(out_cls.shape[0], out_cls.shape[-1])


if __name__ == "__main__":
    key = jax.random.PRNGKey(0)
    k_params, k_x = jax.random.split(key)

    image_size, conv_dim, c_dim, repeat_num, batch = 16, 8, 5, 2, 2
    cfgs, params = init_discriminator(k_params, image_size=image_size,
                                      conv_dim=conv_dim, c_dim=c_dim,
                                      repeat_num=repeat_num)
    x = jax.random.normal(k_x, (batch, 3, image_size, image_size), jnp.float32)

    fwd = jax.jit(make_discriminator_forward(cfgs))
    out_src, out_cls = fwd(params, x)
    out_src = jax.block_until_ready(out_src)
    out_cls = jax.block_until_ready(out_cls)

    expected_spatial = image_size // (2 ** repeat_num)
    assert out_src.shape == (batch, 1, expected_spatial, expected_spatial), \
        out_src.shape
    assert out_cls.shape == (batch, c_dim), out_cls.shape
    assert bool(jnp.all(jnp.isfinite(out_src)))
    assert bool(jnp.all(jnp.isfinite(out_cls)))

    # numerical sanity vs f32 XLA reference (kernel runs bf16 MXU operands
    # with f32 accumulation — precision contract is ~bf16 input quantization).
    ref_src, ref_cls = _ref_forward(cfgs, params, x)
    assert jnp.allclose(out_src, ref_src, atol=2e-2, rtol=2e-2), \
        float(jnp.max(jnp.abs(out_src - ref_src)))
    assert jnp.allclose(out_cls, ref_cls, atol=2e-2, rtol=2e-2), \
        float(jnp.max(jnp.abs(out_cls - ref_cls)))

    print("KERNEL_OK")
</pallas_src>

<mosaic_0001>
module attributes {stable_mosaic.version = 11 : i64} {
  func.func @_matmul_bias_act_kernel(%arg0: i32, %arg1: i32, %arg2: i32, %arg3: memref<64x48xbf16, #tpu.memory_space<vmem>>, %arg4: memref<48x128xbf16, #tpu.memory_space<vmem>>, %arg5: memref<1x128xf32, #tpu.memory_space<vmem>>, %arg6: memref<64x128xbf16, #tpu.memory_space<vmem>>, %arg7: memref<64x128xf32, #tpu.memory_space<vmem>>) attributes {dimension_semantics = [#tpu.dimension_semantics<parallel>, #tpu.dimension_semantics<parallel>, #tpu.dimension_semantics<arbitrary>], iteration_bounds = array<i64: 2, 1, 1>, scalar_prefetch = 0 : i64, scratch_operands = 1 : i64, tpu.core_type = #tpu.core_type<tc>, window_params = [{transform_indices = @transform_0, window_bounds = array<i64: 64, 48>}, {transform_indices = @transform_1, window_bounds = array<i64: 48, 128>}, {transform_indices = @transform_2, window_bounds = array<i64: 1, 128>}, {transform_indices = @transform_3, window_bounds = array<i64: 64, 128>}]} {
    %c0_i32 = arith.constant 0 : i32
    %0 = arith.cmpi eq, %arg2, %c0_i32 : i32
    %1 = arith.extui %0 : i1 to i32
    %c0_i32_0 = arith.constant 0 : i32
    %2 = arith.cmpi ne, %1, %c0_i32_0 : i32
    scf.if %2 {
      %cst_10 = arith.constant 0.000000e+00 : f32
      %12 = vector.broadcast %cst_10 : f32 to vector<64x128xf32>
      %c0_11 = arith.constant 0 : index
      %c0_12 = arith.constant 0 : index
      %13 = vector.load %arg7[%c0_11, %c0_12] : memref<64x128xf32, #tpu.memory_space<vmem>>, vector<64x128xf32>
      tpu.vector_store %arg7[%c0_11, %c0_12], %12 {strides = array<i32>} : memref<64x128xf32, #tpu.memory_space<vmem>>, vector<64x128xf32>,
    } else {
    }
    %c0 = arith.constant 0 : index
    %c0_1 = arith.constant 0 : index
    %3 = vector.load %arg7[%c0, %c0_1] : memref<64x128xf32, #tpu.memory_space<vmem>>, vector<64x128xf32>
    %c0_2 = arith.constant 0 : index
    %c0_3 = arith.constant 0 : index
    %4 = vector.load %arg3[%c0_2, %c0_3] : memref<64x48xbf16, #tpu.memory_space<vmem>>, vector<64x48xbf16>
    %c0_4 = arith.constant 0 : index
    %c0_5 = arith.constant 0 : index
    %5 = vector.load %arg4[%c0_4, %c0_5] : memref<48x128xbf16, #tpu.memory_space<vmem>>, vector<48x128xbf16>
    %cst = arith.constant dense<0.000000e+00> : vector<64x128xf32>
    %6 = tpu.matmul %4, %5, %cst {dimension_numbers = #tpu.dot_dimension_numbers<[1], [0], [0], [1], [0, 0, 1, 1], [], []>} : vector<64x48xbf16>, vector<48x128xbf16>, vector<64x128xf32> -> vector<64x128xf32>
    %7 = arith.addf %3, %6 : vector<64x128xf32>
    %c0_6 = arith.constant 0 : index
    %c0_7 = arith.constant 0 : index
    %8 = vector.load %arg7[%c0_6, %c0_7] : memref<64x128xf32, #tpu.memory_space<vmem>>, vector<64x128xf32>
    tpu.vector_store %arg7[%c0_6, %c0_7], %7 {strides = array<i32>} : memref<64x128xf32, #tpu.memory_space<vmem>>, vector<64x128xf32>,
    %c0_i32_8 = arith.constant 0 : i32
    %9 = arith.cmpi eq, %arg2, %c0_i32_8 : i32
    %10 = arith.extui %9 : i1 to i32
    %c0_i32_9 = arith.constant 0 : i32
    %11 = arith.cmpi ne, %10, %c0_i32_9 : i32
    scf.if %11 {
      %c0_10 = arith.constant 0 : index
      %c0_11 = arith.constant 0 : index
      %12 = vector.load %arg7[%c0_10, %c0_11] : memref<64x128xf32, #tpu.memory_space<vmem>>, vector<64x128xf32>
      %c0_12 = arith.constant 0 : index
      %c0_13 = arith.constant 0 : index
      %13 = vector.load %arg5[%c0_12, %c0_13] : memref<1x128xf32, #tpu.memory_space<vmem>>, vector<1x128xf32>
      %14 = vector.broadcast %13 : vector<1x128xf32> to vector<64x128xf32>
      %15 = arith.addf %12, %14 : vector<64x128xf32>
      %cst_14 = arith.constant 0.000000e+00 : f32
      %16 = vector.broadcast %cst_14 : f32 to vector<64x128xf32>
      %17 = arith.cmpf oge, %15, %16 : vector<64x128xf32>
      %cst_15 = arith.constant 0.00999999977 : f32
      %18 = vector.broadcast %cst_15 : f32 to vector<64x128xf32>
      %19 = arith.mulf %18, %15 : vector<64x128xf32>
      %20 = arith.select %17, %15, %19 : vector<64x128xi1>, vector<64x128xf32>
      %21 = arith.truncf %20 : vector<64x128xf32> to vector<64x128xbf16>
      %c0_16 = arith.constant 0 : index
      %c0_17 = arith.constant 0 : index
      %22 = vector.load %arg6[%c0_16, %c0_17] : memref<64x128xbf16, #tpu.memory_space<vmem>>, vector<64x128xbf16>
      tpu.vector_store %arg6[%c0_16, %c0_17], %21 {strides = array<i32>} : memref<64x128xbf16, #tpu.memory_space<vmem>>, vector<64x128xbf16>,
    } else {
    }
    return
  }
  func.func @transform_0(%arg0: i32, %arg1: i32, %arg2: i32) -> (i32, i32) {
    %c0_i32 = arith.constant 0 : i32
    return %arg0, %arg2 : i32, i32
  }
  func.func @transform_1(%arg0: i32, %arg1: i32, %arg2: i32) -> (i32, i32) {
    %c0_i32 = arith.constant 0 : i32
    return %arg2, %arg1 : i32, i32
  }
  func.func @transform_2(%arg0: i32, %arg1: i32, %arg2: i32) -> (i32, i32) {
    %c0_i32 = arith.constant 0 : i32
    %c0_i32_0 = arith.constant 0 : i32
    return %c0_i32, %arg1 : i32, i32
  }
  func.func @transform_3(%arg0: i32, %arg1: i32, %arg2: i32) -> (i32, i32) {
    %c0_i32 = arith.constant 0 : i32
    return %arg0, %arg1 : i32, i32
  }
}

module attributes {stable_mosaic.version = 11 : i64} {
  func.func @_matmul_bias_act_kernel(%arg0: i32, %arg1: i32, %arg2: i32, %arg3: memref<16x128xbf16, #tpu.memory_space<vmem>>, %arg4: memref<128x128xbf16, #tpu.memory_space<vmem>>, %arg5: memref<1x128xf32, #tpu.memory_space<vmem>>, %arg6: memref<16x128xbf16, #tpu.memory_space<vmem>>, %arg7: memref<16x128xf32, #tpu.memory_space<vmem>>) attributes {dimension_semantics = [#tpu.dimension_semantics<parallel>, #tpu.dimension_semantics<parallel>, #tpu.dimension_semantics<arbitrary>], iteration_bounds = array<i64: 2, 1, 1>, scalar_prefetch = 0 : i64, scratch_operands = 1 : i64, tpu.core_type = #tpu.core_type<tc>, window_params = [{transform_indices = @transform_0, window_bounds = array<i64: 16, 128>}, {transform_indices = @transform_1, window_bounds = array<i64: 128, 128>}, {transform_indices = @transform_2, window_bounds = array<i64: 1, 128>}, {transform_indices = @transform_3, window_bounds = array<i64: 16, 128>}]} {
    %c0_i32 = arith.constant 0 : i32
    %0 = arith.cmpi eq, %arg2, %c0_i32 : i32
    %1 = arith.extui %0 : i1 to i32
    %c0_i32_0 = arith.constant 0 : i32
    %2 = arith.cmpi ne, %1, %c0_i32_0 : i32
    scf.if %2 {
      %cst_10 = arith.constant 0.000000e+00 : f32
      %12 = vector.broadcast %cst_10 : f32 to vector<16x128xf32>
      %c0_11 = arith.constant 0 : index
      %c0_12 = arith.constant 0 : index
      %13 = vector.load %arg7[%c0_11, %c0_12] : memref<16x128xf32, #tpu.memory_space<vmem>>, vector<16x128xf32>
      tpu.vector_store %arg7[%c0_11, %c0_12], %12 {strides = array<i32>} : memref<16x128xf32, #tpu.memory_space<vmem>>, vector<16x128xf32>,
    } else {
    }
    %c0 = arith.constant 0 : index
    %c0_1 = arith.constant 0 : index
    %3 = vector.load %arg7[%c0, %c0_1] : memref<16x128xf32, #tpu.memory_space<vmem>>, vector<16x128xf32>
    %c0_2 = arith.constant 0 : index
    %c0_3 = arith.constant 0 : index
    %4 = vector.load %arg3[%c0_2, %c0_3] : memref<16x128xbf16, #tpu.memory_space<vmem>>, vector<16x128xbf16>
    %c0_4 = arith.constant 0 : index
    %c0_5 = arith.constant 0 : index
    %5 = vector.load %arg4[%c0_4, %c0_5] : memref<128x128xbf16, #tpu.memory_space<vmem>>, vector<128x128xbf16>
    %cst = arith.constant dense<0.000000e+00> : vector<16x128xf32>
    %6 = tpu.matmul %4, %5, %cst {dimension_numbers = #tpu.dot_dimension_numbers<[1], [0], [0], [1], [0, 0, 1, 1], [], []>} : vector<16x128xbf16>, vector<128x128xbf16>, vector<16x128xf32> -> vector<16x128xf32>
    %7 = arith.addf %3, %6 : vector<16x128xf32>
    %c0_6 = arith.constant 0 : index
    %c0_7 = arith.constant 0 : index
    %8 = vector.load %arg7[%c0_6, %c0_7] : memref<16x128xf32, #tpu.memory_space<vmem>>, vector<16x128xf32>
    tpu.vector_store %arg7[%c0_6, %c0_7], %7 {strides = array<i32>} : memref<16x128xf32, #tpu.memory_space<vmem>>, vector<16x128xf32>,
    %c0_i32_8 = arith.constant 0 : i32
    %9 = arith.cmpi eq, %arg2, %c0_i32_8 : i32
    %10 = arith.extui %9 : i1 to i32
    %c0_i32_9 = arith.constant 0 : i32
    %11 = arith.cmpi ne, %10, %c0_i32_9 : i32
    scf.if %11 {
      %c0_10 = arith.constant 0 : index
      %c0_11 = arith.constant 0 : index
      %12 = vector.load %arg7[%c0_10, %c0_11] : memref<16x128xf32, #tpu.memory_space<vmem>>, vector<16x128xf32>
      %c0_12 = arith.constant 0 : index
      %c0_13 = arith.constant 0 : index
      %13 = vector.load %arg5[%c0_12, %c0_13] : memref<1x128xf32, #tpu.memory_space<vmem>>, vector<1x128xf32>
      %14 = vector.broadcast %13 : vector<1x128xf32> to vector<16x128xf32>
      %15 = arith.addf %12, %14 : vector<16x128xf32>
      %cst_14 = arith.constant 0.000000e+00 : f32
      %16 = vector.broadcast %cst_14 : f32 to vector<16x128xf32>
      %17 = arith.cmpf oge, %15, %16 : vector<16x128xf32>
      %cst_15 = arith.constant 0.00999999977 : f32
      %18 = vector.broadcast %cst_15 : f32 to vector<16x128xf32>
      %19 = arith.mulf %18, %15 : vector<16x128xf32>
      %20 = arith.select %17, %15, %19 : vector<16x128xi1>, vector<16x128xf32>
      %21 = arith.truncf %20 : vector<16x128xf32> to vector<16x128xbf16>
      %c0_16 = arith.constant 0 : index
      %c0_17 = arith.constant 0 : index
      %22 = vector.load %arg6[%c0_16, %c0_17] : memref<16x128xbf16, #tpu.memory_space<vmem>>, vector<16x128xbf16>
      tpu.vector_store %arg6[%c0_16, %c0_17], %21 {strides = array<i32>} : memref<16x128xbf16, #tpu.memory_space<vmem>>, vector<16x128xbf16>,
    } else {
    }
    return
  }
  func.func @transform_0(%arg0: i32, %arg1: i32, %arg2: i32) -> (i32, i32) {
    %c0_i32 = arith.constant 0 : i32
    return %arg0, %arg2 : i32, i32
  }
  func.func @transform_1(%arg0: i32, %arg1: i32, %arg2: i32) -> (i32, i32) {
    %c0_i32 = arith.constant 0 : i32
    return %arg2, %arg1 : i32, i32
  }
  func.func @transform_2(%arg0: i32, %arg1: i32, %arg2: i32) -> (i32, i32) {
    %c0_i32 = arith.constant 0 : i32
    %c0_i32_0 = arith.constant 0 : i32
    return %c0_i32, %arg1 : i32, i32
  }
  func.func @transform_3(%arg0: i32, %arg1: i32, %arg2: i32) -> (i32, i32) {
    %c0_i32 = arith.constant 0 : i32
    return %arg0, %arg1 : i32, i32
  }
}

module attributes {stable_mosaic.version = 11 : i64} {
  func.func @_matmul_bias_act_kernel(%arg0: i32, %arg1: i32, %arg2: i32, %arg3: memref<16x256xbf16, #tpu.memory_space<vmem>>, %arg4: memref<256x5xbf16, #tpu.memory_space<vmem>>, %arg5: memref<1x5xf32, #tpu.memory_space<vmem>>, %arg6: memref<16x5xf32, #tpu.memory_space<vmem>>) attributes {dimension_semantics = [#tpu.dimension_semantics<parallel>, #tpu.dimension_semantics<parallel>, #tpu.dimension_semantics<arbitrary>], iteration_bounds = array<i64: 1, 1, 1>, scalar_prefetch = 0 : i64, scratch_operands = 0 : i64, tpu.core_type = #tpu.core_type<tc>, window_params = [{transform_indices = @transform_0, window_bounds = array<i64: 16, 256>}, {transform_indices = @transform_1, window_bounds = array<i64: 256, 5>}, {transform_indices = @transform_2, window_bounds = array<i64: 1, 5>}, {transform_indices = @transform_3, window_bounds = array<i64: 16, 5>}]} {
    %c0_i32 = arith.constant 0 : i32
    %0 = arith.cmpi eq, %arg2, %c0_i32 : i32
    %1 = arith.extui %0 : i1 to i32
    %c0_i32_0 = arith.constant 0 : i32
    %2 = arith.cmpi ne, %1, %c0_i32_0 : i32
    scf.if %2 {
      %cst_10 = arith.constant 0.000000e+00 : f32
      %12 = vector.broadcast %cst_10 : f32 to vector<16x5xf32>
      %c0_11 = arith.constant 0 : index
      %c0_12 = arith.constant 0 : index
      %13 = vector.load %arg6[%c0_11, %c0_12] : memref<16x5xf32, #tpu.memory_space<vmem>>, vector<16x5xf32>
      tpu.vector_store %arg6[%c0_11, %c0_12], %12 {strides = array<i32>} : memref<16x5xf32, #tpu.memory_space<vmem>>, vector<16x5xf32>,
    } else {
    }
    %c0 = arith.constant 0 : index
    %c0_1 = arith.constant 0 : index
    %3 = vector.load %arg6[%c0, %c0_1] : memref<16x5xf32, #tpu.memory_space<vmem>>, vector<16x5xf32>
    %c0_2 = arith.constant 0 : index
    %c0_3 = arith.constant 0 : index
    %4 = vector.load %arg3[%c0_2, %c0_3] : memref<16x256xbf16, #tpu.memory_space<vmem>>, vector<16x256xbf16>
    %c0_4 = arith.constant 0 : index
    %c0_5 = arith.constant 0 : index
    %5 = vector.load %arg4[%c0_4, %c0_5] : memref<256x5xbf16, #tpu.memory_space<vmem>>, vector<256x5xbf16>
    %cst = arith.constant dense<0.000000e+00> : vector<16x5xf32>
    %6 = tpu.matmul %4, %5, %cst {dimension_numbers = #tpu.dot_dimension_numbers<[1], [0], [0], [1], [0, 0, 1, 1], [], []>} : vector<16x256xbf16>, vector<256x5xbf16>, vector<16x5xf32> -> vector<16x5xf32>
    %7 = arith.addf %3, %6 : vector<16x5xf32>
    %c0_6 = arith.constant 0 : index
    %c0_7 = arith.constant 0 : index
    %8 = vector.load %arg6[%c0_6, %c0_7] : memref<16x5xf32, #tpu.memory_space<vmem>>, vector<16x5xf32>
    tpu.vector_store %arg6[%c0_6, %c0_7], %7 {strides = array<i32>} : memref<16x5xf32, #tpu.memory_space<vmem>>, vector<16x5xf32>,
    %c0_i32_8 = arith.constant 0 : i32
    %9 = arith.cmpi eq, %arg2, %c0_i32_8 : i32
    %10 = arith.extui %9 : i1 to i32
    %c0_i32_9 = arith.constant 0 : i32
    %11 = arith.cmpi ne, %10, %c0_i32_9 : i32
    scf.if %11 {
      %c0_10 = arith.constant 0 : index
      %c0_11 = arith.constant 0 : index
      %12 = vector.load %arg6[%c0_10, %c0_11] : memref<16x5xf32, #tpu.memory_space<vmem>>, vector<16x5xf32>
      %c0_12 = arith.constant 0 : index
      %c0_13 = arith.constant 0 : index
      %13 = vector.load %arg5[%c0_12, %c0_13] : memref<1x5xf32, #tpu.memory_space<vmem>>, vector<1x5xf32>
      %14 = vector.broadcast %13 : vector<1x5xf32> to vector<16x5xf32>
      %15 = arith.addf %12, %14 : vector<16x5xf32>
      %c0_14 = arith.constant 0 : index
      %c0_15 = arith.constant 0 : index
      %16 = vector.load %arg6[%c0_14, %c0_15] : memref<16x5xf32, #tpu.memory_space<vmem>>, vector<16x5xf32>
      tpu.vector_store %arg6[%c0_14, %c0_15], %15 {strides = array<i32>} : memref<16x5xf32, #tpu.memory_space<vmem>>, vector<16x5xf32>,
    } else {
    }
    return
  }
  func.func @transform_0(%arg0: i32, %arg1: i32, %arg2: i32) -> (i32, i32) {
    %c0_i32 = arith.constant 0 : i32
    return %arg0, %arg2 : i32, i32
  }
  func.func @transform_1(%arg0: i32, %arg1: i32, %arg2: i32) -> (i32, i32) {
    %c0_i32 = arith.constant 0 : i32
    return %arg2, %arg1 : i32, i32
  }
  func.func @transform_2(%arg0: i32, %arg1: i32, %arg2: i32) -> (i32, i32) {
    %c0_i32 = arith.constant 0 : i32
    %c0_i32_0 = arith.constant 0 : i32
    return %c0_i32, %arg1 : i32, i32
  }
  func.func @transform_3(%arg0: i32, %arg1: i32, %arg2: i32) -> (i32, i32) {
    %c0_i32 = arith.constant 0 : i32
    return %arg0, %arg1 : i32, i32
  }
}

module attributes {stable_mosaic.version = 11 : i64} {
  func.func @_matmul_bias_act_kernel(%arg0: i32, %arg1: i32, %arg2: i32, %arg3: memref<16x144xbf16, #tpu.memory_space<vmem>>, %arg4: memref<144x1xbf16, #tpu.memory_space<vmem>>, %arg5: memref<1x1xf32, #tpu.memory_space<vmem>>, %arg6: memref<16x1xf32, #tpu.memory_space<vmem>>) attributes {dimension_semantics = [#tpu.dimension_semantics<parallel>, #tpu.dimension_semantics<parallel>, #tpu.dimension_semantics<arbitrary>], iteration_bounds = array<i64: 2, 1, 1>, scalar_prefetch = 0 : i64, scratch_operands = 0 : i64, tpu.core_type = #tpu.core_type<tc>, window_params = [{transform_indices = @transform_0, window_bounds = array<i64: 16, 144>}, {transform_indices = @transform_1, window_bounds = array<i64: 144, 1>}, {transform_indices = @transform_2, window_bounds = array<i64: 1, 1>}, {transform_indices = @transform_3, window_bounds = array<i64: 16, 1>}]} {
    %c0_i32 = arith.constant 0 : i32
    %0 = arith.cmpi eq, %arg2, %c0_i32 : i32
    %1 = arith.extui %0 : i1 to i32
    %c0_i32_0 = arith.constant 0 : i32
    %2 = arith.cmpi ne, %1, %c0_i32_0 : i32
    scf.if %2 {
      %cst_10 = arith.constant 0.000000e+00 : f32
      %12 = vector.broadcast %cst_10 : f32 to vector<16x1xf32>
      %c0_11 = arith.constant 0 : index
      %c0_12 = arith.constant 0 : index
      %13 = vector.load %arg6[%c0_11, %c0_12] : memref<16x1xf32, #tpu.memory_space<vmem>>, vector<16x1xf32>
      tpu.vector_store %arg6[%c0_11, %c0_12], %12 {strides = array<i32>} : memref<16x1xf32, #tpu.memory_space<vmem>>, vector<16x1xf32>,
    } else {
    }
    %c0 = arith.constant 0 : index
    %c0_1 = arith.constant 0 : index
    %3 = vector.load %arg6[%c0, %c0_1] : memref<16x1xf32, #tpu.memory_space<vmem>>, vector<16x1xf32>
    %c0_2 = arith.constant 0 : index
    %c0_3 = arith.constant 0 : index
    %4 = vector.load %arg3[%c0_2, %c0_3] : memref<16x144xbf16, #tpu.memory_space<vmem>>, vector<16x144xbf16>
    %c0_4 = arith.constant 0 : index
    %c0_5 = arith.constant 0 : index
    %5 = vector.load %arg4[%c0_4, %c0_5] : memref<144x1xbf16, #tpu.memory_space<vmem>>, vector<144x1xbf16>
    %cst = arith.constant dense<0.000000e+00> : vector<16x1xf32>
    %6 = tpu.matmul %4, %5, %cst {dimension_numbers = #tpu.dot_dimension_numbers<[1], [0], [0], [1], [0, 0, 1, 1], [], []>} : vector<16x144xbf16>, vector<144x1xbf16>, vector<16x1xf32> -> vector<16x1xf32>
    %7 = arith.addf %3, %6 : vector<16x1xf32>
    %c0_6 = arith.constant 0 : index
    %c0_7 = arith.constant 0 : index
    %8 = vector.load %arg6[%c0_6, %c0_7] : memref<16x1xf32, #tpu.memory_space<vmem>>, vector<16x1xf32>
    tpu.vector_store %arg6[%c0_6, %c0_7], %7 {strides = array<i32>} : memref<16x1xf32, #tpu.memory_space<vmem>>, vector<16x1xf32>,
    %c0_i32_8 = arith.constant 0 : i32
    %9 = arith.cmpi eq, %arg2, %c0_i32_8 : i32
    %10 = arith.extui %9 : i1 to i32
    %c0_i32_9 = arith.constant 0 : i32
    %11 = arith.cmpi ne, %10, %c0_i32_9 : i32
    scf.if %11 {
      %c0_10 = arith.constant 0 : index
      %c0_11 = arith.constant 0 : index
      %12 = vector.load %arg6[%c0_10, %c0_11] : memref<16x1xf32, #tpu.memory_space<vmem>>, vector<16x1xf32>
      %c0_12 = arith.constant 0 : index
      %c0_13 = arith.constant 0 : index
      %13 = vector.load %arg5[%c0_12, %c0_13] : memref<1x1xf32, #tpu.memory_space<vmem>>, vector<1x1xf32>
      %14 = vector.broadcast %13 : vector<1x1xf32> to vector<16x1xf32>
      %15 = arith.addf %12, %14 : vector<16x1xf32>
      %c0_14 = arith.constant 0 : index
      %c0_15 = arith.constant 0 : index
      %16 = vector.load %arg6[%c0_14, %c0_15] : memref<16x1xf32, #tpu.memory_space<vmem>>, vector<16x1xf32>
      tpu.vector_store %arg6[%c0_14, %c0_15], %15 {strides = array<i32>} : memref<16x1xf32, #tpu.memory_space<vmem>>, vector<16x1xf32>,
    } else {
    }
    return
  }
  func.func @transform_0(%arg0: i32, %arg1: i32, %arg2: i32) -> (i32, i32) {
    %c0_i32 = arith.constant 0 : i32
    return %arg0, %arg2 : i32, i32
  }
  func.func @transform_1(%arg0: i32, %arg1: i32, %arg2: i32) -> (i32, i32) {
    %c0_i32 = arith.constant 0 : i32
    return %arg2, %arg1 : i32, i32
  }
  func.func @transform_2(%arg0: i32, %arg1: i32, %arg2: i32) -> (i32, i32) {
    %c0_i32 = arith.constant 0 : i32
    %c0_i32_0 = arith.constant 0 : i32
    return %c0_i32, %arg1 : i32, i32
  }
  func.func @transform_3(%arg0: i32, %arg1: i32, %arg2: i32) -> (i32, i32) {
    %c0_i32 = arith.constant 0 : i32
    return %arg0, %arg1 : i32, i32
  }
}

</mosaic_0001>

<bundles_post_ra>
// kernel: forward.4
= control target key start
LH: loop header
LB: loop body
LE: loop exit
PB: predicated region body
PF: predicated region fallthrough
CT: control target
= control target key end

     0   :  { %8 = vsyncpa [#allocation4], 0  ;;  %s1313_s0 = inlined_call_operand.hbm [shape: bf16[128,48], index: 0, kind: input, shape index: {}]   ;;  %s1314_s1 = inlined_call_operand.hbm [shape: bf16[48,128], index: 1, kind: input, shape index: {}]   ;;  %s1315_s2 = inlined_call_operand.hbm [shape: f32[1,128], index: 2, kind: input, shape index: {}]   ;;  %s1316_s3 = inlined_call_operand.hbm [shape: bf16[128,128], index: 3, kind: output, shape index: {}]  }
   0x1   :  { %10 = vsyncpa [#allocation4 + $0x1], 0 }
   0x2   :  { %11 = vsyncpa [#allocation7], 0 }
   0x3   :  { %12 = vsyncpa [#allocation5], 0 }
   0x4   :  { %14 = vsyncpa [#allocation5 + $0x1], 0  ;;  %s1041_s12 = smov 0   ;;  %s1043_s13 = smov 0  }
   0x5   :  { %s1045_s14 = smov 0   ;;  %s1047_s15 = smov 0  }
   0x6   :  { %s1049_s16 = smov 0   ;;  %s1051_s17 = smov 0  }
   0x7 LB: > { %s646_s18 = sadd.s32 4294967295, %s1011_s17   ;;  %s647_s19 = sadd.s32 4294967294, %s1011_s17   ;;  %s1011_s17 = sphi %s1051_s17, %s20_s17   ;;  %s1007_s16 = sphi %s1049_s16, %s1338_s16   ;;  %s1003_s15 = sphi %s1047_s15, %s1337_s15   ;;  %s999_s14 = sphi %s1045_s14, %s1336_s14   ;;  %s995_s13 = sphi %s1043_s13, %s1335_s13   ;;  %s991_s12 = sphi %s1041_s12, %s1334_s12  }
   0x8   : > { %p61_p0 = scmp.ne.s32.totalorder %s995_s13, %s991_s12  ;;  %p1075_p1 = scmp.eq.s32.totalorder %s646_s18, 0 }
   0x9   : > { %p1079_p2 = scmp.eq.s32.totalorder %s646_s18, 1  ;;  %p147_p3 = scmp.eq.s32.totalorder %s647_s19, 1 }
   0xa   : > { %s1321_s20 = scalar_select %p1075_p1, 1, 0 }
   0xb   : > { %p1085_p4 = por %p1075_p1, %p61_p0  ;;  %p648_p5 = scmp.ge.s32.totalorder %s1011_s17, 1 }
   0xc   : > { %p1090_p6 = por %p147_p3, %p61_p0  ;;  %p154_p7 = scmp.lt.s32.totalorder %s1011_s17, 3 }
   0xd   : > { %s1323_s22 = scalar_select %p1085_p4, 1, 0 }
   0xe   : > { %s1324_s23 = scalar_select %p1090_p6, 1, 0 }
   0xf   : > { %p1095_p8 = pnand %p648_p5, %p154_p7  ;;  %s1013_s25 = smov [#allocation6]  }
  0x10   : > { %s170_s26 = sshll.u32 %s1013_s25, 4  ;;  %s1014_s28 = smov [#allocation8]   ;;  %s1099_s26 = int_to_ptr.vmem [resolvable:$true] %s170_s26 }
  0x11   : > { %p757_p9 = pneg %p1095_p8  ;;  %s186_s29 = sshll.u32 %s1014_s28, 4  ;;  %s1110_s29 = int_to_ptr.vmem [resolvable:$true] %s186_s29 }
  0x12   : > { %s839_s5 = scalar_lea.hbm %s1314_s1, 384 }
  0x13   : > { %p1106_p11 = pnand %p757_p9, %p1075_p1  ;;  %p840_p12 = scmp.ne.s32.totalorder %s1314_s1, %s839_s5 }
  0x14   : > { %p846_p5 = scmp.lt.u32.totalorder %s839_s5, %s1314_s1 }
  0x15   : > { %p841_p13 = pneg %p1106_p11 }
  0x17   : > { %p842_p0 = pnand %p841_p13, %p840_p12 }
  0x19   : > { %p843_p3 = pneg %p842_p0 }
  0x1b   : > { %p848_p7 = pnand %p846_p5, %p843_p3 }
  0x1d   : > { %851 = shalt.err (!%p848_p7)
}
  0x1e   : > { %s852_s10 = scalar_lea.vmem %s1099_s26, 384  ;;  %p860_p1 = scmp.lt.s32.totalorder %s1099_s26, %s1099_s26 }
  0x1f   : > { %p853_p9 = scmp.ne.s32.totalorder %s1099_s26, %s852_s10  ;;  %p861_p12 = scmp.lt.s32.totalorder %s852_s10, %s852_s10 }
  0x21   : > { %p855_p10 = pnand %p853_p9, %p841_p13  ;;  %p862_p0 = por %p861_p12, %p860_p1 }
  0x23   : > { %p856_p6 = pneg %p855_p10 }
  0x25   : > { %p863_p4 = pnand %p862_p0, %p856_p6 }
  0x27   : > { %866 = shalt.err (!%p863_p4)
}
  0x28   : > { %s1015_s11 = smov 64   ;;  %s1016_s18 = smov 4  }
  0x29   : > { %760 = dma.hbm_to_vmem [thread:$0]  (!%p1106_p11), %s1314_s1, 384, %s1099_s26, [#allocation7], %s1015_s11, %s1015_s11, %s1016_s18  }
  0x2a   : > { %s867_s4 = scalar_lea.hbm %s1315_s2, 16 }
  0x2b   : > { %p868_p1 = scmp.ne.s32.totalorder %s1315_s2, %s867_s4  ;;  %p874_p10 = scmp.lt.u32.totalorder %s867_s4, %s1315_s2 }
  0x2d   : > { %p870_p4 = pnand %p868_p1, %p841_p13 }
  0x2f   : > { %p871_p6 = pneg %p870_p4 }
  0x31   : > { %p876_p3 = pnand %p874_p10, %p871_p6 }
  0x33   : > { %879 = shalt.err (!%p876_p3)
}
  0x34   : > { %s880_s26 = scalar_lea.vmem %s1110_s29, 16  ;;  %s887_s9 = scalar_lea.vmem %s1110_s29, 32 }
  0x35   : > { %p881_p5 = scmp.ne.s32.totalorder %s1110_s29, %s880_s26  ;;  %p888_p12 = scmp.lt.s32.totalorder %s1110_s29, %s1110_s29 }
  0x36   : > { %p889_p0 = scmp.lt.s32.totalorder %s887_s9, %s880_s26 }
  0x37   : > { %p883_p7 = pnand %p881_p5, %p841_p13 }
  0x38   : > { %p890_p1 = por %p889_p0, %p888_p12 }
  0x39   : > { %p884_p9 = pneg %p883_p7 }
  0x3b   : > { %p891_p4 = pnand %p890_p1, %p884_p9 }
  0x3d   : > { %894 = shalt.err (!%p891_p4)
}
  0x3e   : > { %763 = dma.hbm_to_vmem [thread:$0]  (!%p1106_p11), %s1315_s2, 16, %s1110_s29, [#allocation7]  }
  0x3f   : > { %s39_s25 = sadd.s32 1, %s1007_s16  ;;  %s48_s28 = sadd.s32 1, %s999_s14 }
  0x40   : > { %p41_p13 = scmp.ge.s32.totalorder %s39_s25, 2  ;;  %p55_p6 = scmp.ne.s32.totalorder %s999_s14, %s995_s13 }
  0x41   : > { %p56_p10 = scmp.eq.s32.totalorder %s1011_s17, 0  ;;  %p774_p3 = scmp.lt.s32.totalorder %s1011_s17, 2 }
  0x42   : > { %s1340_s25 = smov (%p41_p13, %s39_s25), 0  ;;  %p1178_p7 = por %p1079_p2, %p55_p6 }
  0x43   : > { %p57_p5 = por %p56_p10, %p55_p6  ;;  %s43_s30 = ssub.s32 %s1007_s16, %s1340_s25 }
  0x44   : > { %s1327_s27 = scalar_select %p1178_p7, 1, 0 }
  0x45   : > { %s197_s4 = sand.u32 1, %s999_s14   ;;  %p46_p9 = scmp.eq.s32.totalorder %s43_s30, 0 }
  0x46   : > { %s652_s29 = sshll.u32 %s197_s4, 5  ;;  %s685_s5 = sshll.u32 %s1007_s16, 9 }
  0x47   : > { %s1187_s6 = scalar_select %p46_p9, %s999_s14, %s48_s28  }
  0x48   : > { %s1192_s26 = scalar_lea.hbm %s1313_s0, %s685_s5  ;;  %s201_s21 = scalar_lea.vmem [#allocation3], %s652_s29 }
  0x49   : > { %s209_s9 = sshll.u32 %s201_s21, 4  ;;  %p1196_p2 = pnand %p774_p3, %p57_p5  ;;  %s1200_s9 = int_to_ptr.vmem [resolvable:$true] %s209_s9 }
  0x4a   : > { %s1202_s19 = scalar_lea.sflag [#allocation4], %s197_s4  ;;  %s895_s28 = scalar_lea.hbm %s1192_s26, 512 }
  0x4b   : > { %p896_p11 = scmp.ne.s32.totalorder %s1192_s26, %s895_s28  ;;  %p897_p12 = pneg %p1196_p2 }
  0x4c   : > { %s900_s5 = scalar_lea.hbm %s1313_s0, 1024  ;;  %p901_p4 = scmp.lt.u32.totalorder %s1192_s26, %s1313_s0 }
  0x4d   : > { %p898_p0 = pnand %p897_p12, %p896_p11  ;;  %p902_p13 = scmp.lt.u32.totalorder %s900_s5, %s895_s28 }
  0x4e   : > { %p904_p10 = scmp.lt.u32.totalorder %s895_s28, %s1192_s26 }
  0x4f   : > { %p899_p1 = pneg %p898_p0  ;;  %p903_p6 = por %p902_p13, %p901_p4 }
  0x51   : > { %p905_p3 = por %p904_p10, %p903_p6 }
  0x53   : > { %p906_p5 = pnand %p905_p3, %p899_p1 }
  0x55   : > { %909 = shalt.err (!%p906_p5)
}
  0x56   : > { %s910_s4 = scalar_lea.vmem %s1200_s9, 512  ;;  %s1017_s21 = smov [#allocation3]  }
  0x57   : > { %p911_p9 = scmp.ne.s32.totalorder %s1200_s9, %s910_s4  ;;  %s915_s30 = sshll.u32 %s1017_s21, 4  ;;  %s916_s30 = int_to_ptr.vmem [resolvable:$false] %s915_s30 }
  0x58   : > { %s917_s29 = scalar_lea.vmem %s916_s30, 1024  ;;  %p918_p7 = scmp.lt.s32.totalorder %s1200_s9, %s916_s30 }
  0x59   : > { %p913_p11 = pnand %p911_p9, %p897_p12  ;;  %p919_p4 = scmp.lt.s32.totalorder %s917_s29, %s910_s4 }
  0x5b   : > { %p914_p0 = pneg %p913_p11  ;;  %p920_p13 = por %p919_p4, %p918_p7 }
  0x5d   : > { %p921_p6 = pnand %p920_p13, %p914_p0 }
  0x5f   : > { %924 = shalt.err (!%p921_p6)
}
  0x60   : > { %767 = dma.hbm_to_vmem [thread:$0]  (!%p1196_p2), %s1192_s26, 512, %s1200_s9, %s1202_s19, %s1015_s11, %s1015_s11, %s1016_s18  }
  0x61   : > { %221 = sbr.rel (%p1095_p8) target bundleno = 360 (0x168), region = 32  ;;  %s1236_s28 = sand.u32 (!%p1095_p8), 1, %s995_s13  }
  0x62   : > { %s656_s5 = sshll.u32 (!%p1095_p8), %s1236_s28, 5  ;;  %s224_s7 = scalar_lea.sflag (!%p1095_p8), [#allocation4], %s1236_s28 }
  0x63   : > { %s227_s10 = scalar_lea.vmem (!%p1095_p8), [#allocation3], %s656_s5  ;;  %p1329_p7 = scmp.ne.s32.totalorder (!%p1095_p8), %s1323_s22, 0 }
  0x68   : > { %978 = dma.done.wait (%p1329_p7), %s224_s7, 512  }
  0x69   : > { %980 = vsyncadd (%p1329_p7), %s224_s7, 4294966784  ;;  %p1330_p2 = scmp.ne.s32.totalorder %s1321_s20, 0 }
  0x6b   : > { %982 = dma.done.wait (%p1330_p2), [#allocation7], 400  }
  0x6c   : > { %984 = vsyncadd (%p1330_p2), [#allocation7], 4294966896  ;;  %v832_v0 = vld [vmem:[#allocation6] sm:$0xff]   ;;  %v833_v1 = vld [vmem:[#allocation6 + $0x8] sm:$0xff]   ;;  %vm334_vm0 = vcmask 392192   ;;  %s257_s20 = scalar_lea.vmem [#allocation9], %s656_s5 }
  0x6d   : > { %725 = vmatprep.subr.bf16.mxu0 %v832_v0  ;;  %739 = vmatprep.subr.bf16.mxu1 %v832_v0  ;;  %v834_v2 = vld [vmem:[#allocation6 + $0x10] sm:$0xff]   ;;  %v835_v3 = vld [vmem:[%s227_s10] sm:$0xff]   ;;  %v837_v5 = vld [vmem:[%s227_s10 + $0x8] sm:$0xff]   ;;  %s533_s22 = sshll.u32 %s257_s20, 4  ;;  %s694_s24 = sshll.u32 %s1003_s15, 9  ;;  %s1259_s22 = int_to_ptr.vmem [resolvable:$true] %s533_s22 }
  0x6e   : > { %726 = vmatpush3.bf16.msra.mxu0 %v832_v0  ;;  %742 = vmatpush3.bf16.msra.mxu1 %v832_v0  ;;  %v836_v4 = vld [vmem:[%s227_s10 + $0x10] sm:$0xff]   ;;  %v838_v6 = vld [vmem:[%s227_s10 + $0x18] sm:$0xff]   ;;  %s1264_s18 = scalar_lea.hbm %s1316_s3, %s694_s24  ;;  %s519_s26 = scalar_lea.sflag [#allocation5], %s1236_s28 }
  0x6f   : > { %727 = vmatprep.subr.bf16.mxu0 %v833_v1  ;;  %740 = vmatprep.subr.bf16.mxu1 %v833_v1  ;;  %v671_v7 = vld [vmem:[#allocation8] ss:$0 sm:$0xff]  ;;  %s925_s9 = scalar_lea.vmem %s1259_s22, 512  ;;  %p1331_p12 = scmp.ne.s32.totalorder %s1327_s27, 0 }
  0x70   : > { %731 = vmatprep.mubr.msk.bf16.mxu0 %vm334_vm0, %v835_v3  ;;  %735 = vmatprep.mubr.msk.bf16.mxu1 %vm334_vm0, %v836_v4  ;;  %p926_p8 = scmp.ne.s32.totalorder %s1259_s22, %s925_s9  ;;  %s1018_s19 = smov [#allocation9]  }
  0x71   : > { %s929_s8 = sshll.u32 %s1018_s19, 4  ;;  %s930_s8 = int_to_ptr.vmem [resolvable:$false] %s929_s8 }
  0x72   : > { %728 = vmatpush3.bf16.msra.mxu0 %v833_v1  ;;  %743 = vmatpush3.bf16.msra.mxu1 %v833_v1  ;;  %p927_p1 = pnand %p926_p8, %p1331_p12  ;;  %s931_s4 = scalar_lea.vmem %s930_s8, 1024 }
  0x73   : > { %729 = vmatprep.subr.bf16.mxu0 %v834_v2  ;;  %741 = vmatprep.subr.bf16.mxu1 %v834_v2  ;;  %p932_p3 = scmp.lt.s32.totalorder %s1259_s22, %s930_s8  ;;  %p933_p5 = scmp.lt.s32.totalorder %s931_s4, %s925_s9 }
  0x74   : > { %p928_p10 = pneg %p927_p1 }
  0x75   : > { %p934_p9 = por %p933_p5, %p932_p3 }
  0x76   : > { %730 = vmatpush3.bf16.msra.mxu0 %v834_v2  ;;  %744 = vmatpush3.bf16.msra.mxu1 %v834_v2 }
  0x77   : > { %p935_p11 = pnand %p934_p9, %p928_p10 }
  0x79   : > { %732 = vmatmul.mubr.msk.bf16.vlgmr.msra.gmra.mrb[0].mxu0 %vm334_vm0, %v837_v5  ;;  %736 = vmatmul.mubr.msk.bf16.vlgmr.msra.gmra.mrb[0].mxu1 %vm334_vm0, %v838_v6 }
 0x14c   : > { %v733_v8 = vpop.f32.mrb[0].mxu0  ;;  %v737_v9 = vpop.f32.mrb[0].mxu1 }
 0x14d   : > { %v448_v10 = vadd.f32 %v733_v8, %v671_v7  ;;  %v452_v11 = vadd.f32 %v737_v9, %v671_v7  ;;  %v381_v12 = vpop.f32.mrb[1].mxu0  ;;  %v397_v13 = vpop.f32.mrb[1].mxu1 }
 0x14e   : > { %v446_v14 = vadd.f32 %v671_v7, %v381_v12  ;;  %v450_v15 = vadd.f32 %v671_v7, %v397_v13  ;;  %v734_v16 = vpop.f32.mrb[2].mxu0  ;;  %v738_v17 = vpop.f32.mrb[2].mxu1 }
 0x14f   : > { %vm456_vm1 = vcmp.ge.f32.partialorder %v448_v10, 0.0  ;;  %v464_v18 = vmul.f32 0.01, %v448_v10  ;;  %vm460_vm2 = vcmp.ge.f32.partialorder %v452_v11, 0.0  ;;  %v468_v19 = vmul.f32 0.01, %v452_v11 }
 0x150   : > { %vm454_vm3 = vcmp.ge.f32.partialorder %v446_v14, 0.0  ;;  %v462_v20 = vmul.f32 0.01, %v446_v14  ;;  %vm458_vm4 = vcmp.ge.f32.partialorder %v450_v15, 0.0  ;;  %v466_v21 = vmul.f32 0.01, %v450_v15 }
 0x151   : > { %v449_v22 = vadd.f32 %v734_v16, %v671_v7  ;;  %v453_v23 = vadd.f32 %v738_v17, %v671_v7  ;;  %v384_v24 = vpop.f32.mrb[3].mxu0  ;;  %v400_v25 = vpop.f32.mrb[3].mxu1  ;;  %v472_v26 = vsel %vm456_vm1, %v448_v10, %v464_v18  ;;  %v476_v27 = vsel %vm460_vm2, %v452_v11, %v468_v19 }
 0x152   : > { %v447_v28 = vadd.f32 %v671_v7, %v384_v24  ;;  %v451_v29 = vadd.f32 %v671_v7, %v400_v25  ;;  %v470_v34 = vsel %vm454_vm3, %v446_v14, %v462_v20  ;;  %v474_v35 = vsel %vm458_vm4, %v450_v15, %v466_v21 }
 0x153   : > { %vm457_vm5 = vcmp.ge.f32.partialorder %v449_v22, 0.0  ;;  %v465_v30 = vmul.f32 0.01, %v449_v22  ;;  %vm461_vm6 = vcmp.ge.f32.partialorder %v453_v23, 0.0  ;;  %v469_v31 = vmul.f32 0.01, %v453_v23 }
 0x154   : > { %vm455_vm7 = vcmp.ge.f32.partialorder %v447_v28, 0.0  ;;  %v463_v32 = vmul.f32 0.01, %v447_v28  ;;  %vm459_vm8 = vcmp.ge.f32.partialorder %v451_v29, 0.0  ;;  %v467_v33 = vmul.f32 0.01, %v451_v29 }
 0x155   : > { %v473_v36 = vsel %vm457_vm5, %v449_v22, %v465_v30  ;;  %v477_v37 = vsel %vm461_vm6, %v453_v23, %v469_v31 }
 0x156   : > { %v703_v38 = vpack.c.bf16 %v473_v36, %v472_v26  ;;  %v713_v39 = vpack.c.bf16 %v477_v37, %v476_v27  ;;  %v471_v40 = vsel %vm455_vm7, %v447_v28, %v463_v32  ;;  %v475_v41 = vsel %vm459_vm8, %v451_v29, %v467_v33 }
 0x157   : > { %v698_v42 = vpack.c.bf16 %v471_v40, %v470_v34  ;;  %v708_v43 = vpack.c.bf16 %v475_v41, %v474_v35 }
 0x158   : > { %715 = vst [vmem:[%s257_s20 + $0x8] sm:$0xff] %v703_v38   ;;  %717 = vst [vmem:[%s257_s20 + $0x18] sm:$0xff] %v713_v39  }
 0x159   : > { %699 = vst [vmem:[%s257_s20] sm:$0xff] %v698_v42   ;;  %716 = vst [vmem:[%s257_s20 + $0x10] sm:$0xff] %v708_v43  }
 0x15a   : > { %938 = shalt.err (!%p935_p11)
}
 0x15b   : > { %s939_s21 = scalar_lea.hbm %s1264_s18, 512  ;;  %s943_s5 = scalar_lea.hbm %s1316_s3, 1024 }
 0x15c   : > { %p940_p0 = scmp.ne.s32.totalorder %s1264_s18, %s939_s21  ;;  %p944_p6 = scmp.lt.u32.totalorder %s1264_s18, %s1316_s3 }
 0x15d   : > { %p945_p7 = scmp.lt.u32.totalorder %s943_s5, %s939_s21  ;;  %p947_p8 = scmp.lt.u32.totalorder %s939_s21, %s1264_s18 }
 0x15e   : > { %p941_p4 = pnand %p940_p0, %p1331_p12 }
 0x15f   : > { %p946_p2 = por %p945_p7, %p944_p6 }
 0x160   : > { %p942_p13 = pneg %p941_p4 }
 0x161   : > { %p948_p1 = por %p947_p8, %p946_p2 }
 0x163   : > { %p949_p10 = pnand %p948_p1, %p942_p13 }
 0x165   : > { %952 = shalt.err (!%p949_p10)
}
 0x166   : > { %s1019_s20 = smov 64   ;;  %s1020_s24 = smov 4  }
 0x167   : > { %755 = dma.vmem_to_hbm [thread:$0]  (%p1331_p12), %s1259_s22, 512, %s1264_s18, %s519_s26, %s1019_s20, %s1019_s20, %s1020_s24  }
 0x168 PF: > { %s548_s15 = sand.u32 1, %s991_s12   ;;  %p1332_p3 = scmp.ne.s32.totalorder %s1324_s23, 0 }
 0x169   : > { %p1333_p5 = scmp.ge.s32.totalorder %s1011_s17, 2  ;;  %s549_s11 = scalar_lea.sflag [#allocation5], %s548_s15 }
 0x16b   : > { %p769_p9 = pnand %p1333_p5, %p1332_p3 }
 0x16d   : > { %986 = dma.done.wait (!%p769_p9), %s549_s11, 512  }
 0x16e   : > { %988 = vsyncadd (!%p769_p9), %s549_s11, 4294966784  ;;  %s20_s17 = sadd.s32 1, %s1011_s17   ;;  %s1334_s12 = smov %s995_s13 }
 0x16f   : > { %p17_p11 = scmp.ge.s32.totalorder %s20_s17, 4   ;;  %s1335_s13 = smov %s999_s14 }
 0x170   : > { %s1336_s14 = smov %s1187_s6  ;;  %s1337_s15 = smov %s1007_s16 }
 0x171   : > { %s1338_s16 = smov %s1340_s25  ;;  %19 = sbr.rel (!%p17_p11) target bundleno = 7 (0x7), region = 95 }
 0x178   :  { %554 = vsyncpa [#allocation4], 1 }
 0x179   :  { %556 = vsyncpa [#allocation4 + $0x1], 1 }
 0x17a   :  { %557 = vsyncpa [#allocation7], 1 }
 0x17b   :  { %558 = vsyncpa [#allocation5], 1 }
 0x17c   :  { %560 = vsyncpa [#allocation5 + $0x1], 1 }

// kernel: forward.5
= control target key start
LH: loop header
LB: loop body
LE: loop exit
PB: predicated region body
PF: predicated region fallthrough
CT: control target
= control target key end

     0   :  { %8 = vsyncpa [#allocation4], 0  ;;  %s1185_s0 = inlined_call_operand.hbm [shape: bf16[32,128], index: 0, kind: input, shape index: {}]   ;;  %s1186_s1 = inlined_call_operand.hbm [shape: bf16[128,128], index: 1, kind: input, shape index: {}]   ;;  %s1187_s2 = inlined_call_operand.hbm [shape: f32[1,128], index: 2, kind: input, shape index: {}]   ;;  %s1188_s3 = inlined_call_operand.hbm [shape: bf16[32,128], index: 3, kind: output, shape index: {}]  }
   0x1   :  { %10 = vsyncpa [#allocation4 + $0x1], 0 }
   0x2   :  { %11 = vsyncpa [#allocation7], 0 }
   0x3   :  { %12 = vsyncpa [#allocation5], 0 }
   0x4   :  { %14 = vsyncpa [#allocation5 + $0x1], 0  ;;  %s916_s12 = smov 0   ;;  %s918_s13 = smov 0  }
   0x5   :  { %s920_s14 = smov 0   ;;  %s922_s15 = smov 0  }
   0x6   :  { %s924_s16 = smov 0   ;;  %s926_s17 = smov 0  }
   0x7 LB: > { %s545_s18 = sadd.s32 4294967295, %s884_s17   ;;  %s546_s19 = sadd.s32 4294967294, %s884_s17   ;;  %s884_s17 = sphi %s926_s17, %s20_s17   ;;  %s880_s16 = sphi %s924_s16, %s1210_s16   ;;  %s876_s15 = sphi %s922_s15, %s1209_s15   ;;  %s872_s14 = sphi %s920_s14, %s1208_s14   ;;  %s868_s13 = sphi %s918_s13, %s1207_s13   ;;  %s864_s12 = sphi %s916_s12, %s1206_s12  }
   0x8   : > { %p61_p0 = scmp.ne.s32.totalorder %s868_s13, %s864_s12  ;;  %p950_p1 = scmp.eq.s32.totalorder %s545_s18, 0 }
   0x9   : > { %p954_p2 = scmp.eq.s32.totalorder %s545_s18, 1  ;;  %p147_p3 = scmp.eq.s32.totalorder %s546_s19, 1 }
   0xa   : > { %s1193_s20 = scalar_select %p950_p1, 1, 0 }
   0xb   : > { %p960_p4 = por %p950_p1, %p61_p0  ;;  %p547_p5 = scmp.ge.s32.totalorder %s884_s17, 1 }
   0xc   : > { %p965_p6 = por %p147_p3, %p61_p0  ;;  %p154_p7 = scmp.lt.s32.totalorder %s884_s17, 3 }
   0xd   : > { %s1195_s22 = scalar_select %p960_p4, 1, 0 }
   0xe   : > { %s1196_s23 = scalar_select %p965_p6, 1, 0 }
   0xf   : > { %p970_p8 = pnand %p547_p5, %p154_p7  ;;  %s886_s25 = smov [#allocation6]  }
  0x10   : > { %s170_s26 = sshll.u32 %s886_s25, 4  ;;  %s887_s28 = smov [#allocation8]   ;;  %s974_s26 = int_to_ptr.vmem [resolvable:$true] %s170_s26 }
  0x11   : > { %p626_p9 = pneg %p970_p8  ;;  %s186_s29 = sshll.u32 %s887_s28, 4  ;;  %s985_s29 = int_to_ptr.vmem [resolvable:$true] %s186_s29 }
  0x12   : > { %s712_s5 = scalar_lea.hbm %s1186_s1, 1024 }
  0x13   : > { %p981_p11 = pnand %p626_p9, %p950_p1  ;;  %p713_p12 = scmp.ne.s32.totalorder %s1186_s1, %s712_s5 }
  0x14   : > { %p719_p5 = scmp.lt.u32.totalorder %s712_s5, %s1186_s1 }
  0x15   : > { %p714_p13 = pneg %p981_p11 }
  0x17   : > { %p715_p0 = pnand %p714_p13, %p713_p12 }
  0x19   : > { %p716_p3 = pneg %p715_p0 }
  0x1b   : > { %p721_p7 = pnand %p719_p5, %p716_p3 }
  0x1d   : > { %724 = shalt.err (!%p721_p7)
}
  0x1e   : > { %s725_s10 = scalar_lea.vmem %s974_s26, 1024  ;;  %p733_p1 = scmp.lt.s32.totalorder %s974_s26, %s974_s26 }
  0x1f   : > { %p726_p9 = scmp.ne.s32.totalorder %s974_s26, %s725_s10  ;;  %p734_p12 = scmp.lt.s32.totalorder %s725_s10, %s725_s10 }
  0x21   : > { %p728_p10 = pnand %p726_p9, %p714_p13  ;;  %p735_p0 = por %p734_p12, %p733_p1 }
  0x23   : > { %p729_p6 = pneg %p728_p10 }
  0x25   : > { %p736_p4 = pnand %p735_p0, %p729_p6 }
  0x27   : > { %739 = shalt.err (!%p736_p4)
}
  0x28   : > { %s888_s11 = smov 64   ;;  %s889_s18 = smov 4  }
  0x29   : > { %629 = dma.hbm_to_vmem [thread:$0]  (!%p981_p11), %s1186_s1, 1024, %s974_s26, [#allocation7], %s888_s11, %s888_s11, %s889_s18  }
  0x2a   : > { %s740_s4 = scalar_lea.hbm %s1187_s2, 16 }
  0x2b   : > { %p741_p1 = scmp.ne.s32.totalorder %s1187_s2, %s740_s4  ;;  %p747_p10 = scmp.lt.u32.totalorder %s740_s4, %s1187_s2 }
  0x2d   : > { %p743_p4 = pnand %p741_p1, %p714_p13 }
  0x2f   : > { %p744_p6 = pneg %p743_p4 }
  0x31   : > { %p749_p3 = pnand %p747_p10, %p744_p6 }
  0x33   : > { %752 = shalt.err (!%p749_p3)
}
  0x34   : > { %s753_s26 = scalar_lea.vmem %s985_s29, 16  ;;  %s760_s9 = scalar_lea.vmem %s985_s29, 32 }
  0x35   : > { %p754_p5 = scmp.ne.s32.totalorder %s985_s29, %s753_s26  ;;  %p761_p12 = scmp.lt.s32.totalorder %s985_s29, %s985_s29 }
  0x36   : > { %p762_p0 = scmp.lt.s32.totalorder %s760_s9, %s753_s26 }
  0x37   : > { %p756_p7 = pnand %p754_p5, %p714_p13 }
  0x38   : > { %p763_p1 = por %p762_p0, %p761_p12 }
  0x39   : > { %p757_p9 = pneg %p756_p7 }
  0x3b   : > { %p764_p4 = pnand %p763_p1, %p757_p9 }
  0x3d   : > { %767 = shalt.err (!%p764_p4)
}
  0x3e   : > { %632 = dma.hbm_to_vmem [thread:$0]  (!%p981_p11), %s1187_s2, 16, %s985_s29, [#allocation7]  }
  0x3f   : > { %s39_s25 = sadd.s32 1, %s880_s16  ;;  %s48_s28 = sadd.s32 1, %s872_s14 }
  0x40   : > { %p41_p13 = scmp.ge.s32.totalorder %s39_s25, 2  ;;  %p55_p6 = scmp.ne.s32.totalorder %s872_s14, %s868_s13 }
  0x41   : > { %p56_p10 = scmp.eq.s32.totalorder %s884_s17, 0  ;;  %p643_p3 = scmp.lt.s32.totalorder %s884_s17, 2 }
  0x42   : > { %s1212_s25 = smov (%p41_p13, %s39_s25), 0  ;;  %p1053_p7 = por %p954_p2, %p55_p6 }
  0x43   : > { %p57_p5 = por %p56_p10, %p55_p6  ;;  %s43_s30 = ssub.s32 %s880_s16, %s1212_s25 }
  0x44   : > { %s1199_s27 = scalar_select %p1053_p7, 1, 0 }
  0x45   : > { %s197_s4 = sand.u32 1, %s872_s14   ;;  %p46_p9 = scmp.eq.s32.totalorder %s43_s30, 0 }
  0x46   : > { %s551_s29 = sshll.u32 %s197_s4, 3  ;;  %s576_s5 = sshll.u32 %s880_s16, 7 }
  0x47   : > { %s1062_s6 = scalar_select %p46_p9, %s872_s14, %s48_s28  }
  0x48   : > { %s1067_s26 = scalar_lea.hbm %s1185_s0, %s576_s5  ;;  %s201_s21 = scalar_lea.vmem [#allocation3], %s551_s29 }
  0x49   : > { %s209_s9 = sshll.u32 %s201_s21, 4  ;;  %p1071_p2 = pnand %p643_p3, %p57_p5  ;;  %s1075_s9 = int_to_ptr.vmem [resolvable:$true] %s209_s9 }
  0x4a   : > { %s1077_s19 = scalar_lea.sflag [#allocation4], %s197_s4  ;;  %s768_s28 = scalar_lea.hbm %s1067_s26, 128 }
  0x4b   : > { %p769_p11 = scmp.ne.s32.totalorder %s1067_s26, %s768_s28  ;;  %p770_p12 = pneg %p1071_p2 }
  0x4c   : > { %s773_s5 = scalar_lea.hbm %s1185_s0, 256  ;;  %p774_p4 = scmp.lt.u32.totalorder %s1067_s26, %s1185_s0 }
  0x4d   : > { %p771_p0 = pnand %p770_p12, %p769_p11  ;;  %p775_p13 = scmp.lt.u32.totalorder %s773_s5, %s768_s28 }
  0x4e   : > { %p777_p10 = scmp.lt.u32.totalorder %s768_s28, %s1067_s26 }
  0x4f   : > { %p772_p1 = pneg %p771_p0  ;;  %p776_p6 = por %p775_p13, %p774_p4 }
  0x51   : > { %p778_p3 = por %p777_p10, %p776_p6 }
  0x53   : > { %p779_p5 = pnand %p778_p3, %p772_p1 }
  0x55   : > { %782 = shalt.err (!%p779_p5)
}
  0x56   : > { %s783_s4 = scalar_lea.vmem %s1075_s9, 128  ;;  %s890_s21 = smov [#allocation3]  }
  0x57   : > { %p784_p9 = scmp.ne.s32.totalorder %s1075_s9, %s783_s4  ;;  %s788_s30 = sshll.u32 %s890_s21, 4  ;;  %s789_s30 = int_to_ptr.vmem [resolvable:$false] %s788_s30 }
  0x58   : > { %s790_s29 = scalar_lea.vmem %s789_s30, 256  ;;  %p791_p7 = scmp.lt.s32.totalorder %s1075_s9, %s789_s30 }
  0x59   : > { %p786_p11 = pnand %p784_p9, %p770_p12  ;;  %p792_p4 = scmp.lt.s32.totalorder %s790_s29, %s783_s4 }
  0x5b   : > { %p787_p0 = pneg %p786_p11  ;;  %p793_p13 = por %p792_p4, %p791_p7 }
  0x5d   : > { %p794_p6 = pnand %p793_p13, %p787_p0 }
  0x5f   : > { %797 = shalt.err (!%p794_p6)
}
  0x60   : > { %636 = dma.hbm_to_vmem [thread:$0]  (!%p1071_p2), %s1067_s26, 128, %s1075_s9, %s1077_s19, %s888_s11, %s888_s11, %s889_s18  }
  0x61   : > { %221 = sbr.rel (%p970_p8) target bundleno = 377 (0x179), region = 32  ;;  %s1111_s28 = sand.u32 (!%p970_p8), 1, %s868_s13  }
  0x62   : > { %s555_s5 = sshll.u32 (!%p970_p8), %s1111_s28, 3  ;;  %s224_s7 = scalar_lea.sflag (!%p970_p8), [#allocation4], %s1111_s28 }
  0x63   : > { %s1117_s10 = scalar_lea.vmem (!%p970_p8), [#allocation3], %s555_s5  ;;  %p1201_p7 = scmp.ne.s32.totalorder (!%p970_p8), %s1195_s22, 0 }
  0x68   : > { %851 = dma.done.wait (%p1201_p7), %s224_s7, 128  }
  0x69   : > { %853 = vsyncadd (%p1201_p7), %s224_s7, 4294967168  ;;  %p1202_p2 = scmp.ne.s32.totalorder %s1193_s20, 0 }
  0x6b   : > { %855 = dma.done.wait (%p1202_p2), [#allocation7], 1040  }
  0x6c   : > { %857 = vsyncadd (%p1202_p2), [#allocation7], 4294966256  ;;  %v891_v0 = vmov 0.0   ;;  %vm892_vm0 = vmmov 0   ;;  %v703_v1 = vld [vmem:[#allocation6] sm:$0xff]   ;;  %v704_v2 = vld [vmem:[#allocation6 + $0x8] sm:$0xff]  }
  0x6d   : > { %594 = vmatprep.subr.bf16.mxu0 %v891_v0  ;;  %610 = vmatprep.mubr.msk.bf16.mxu0 %vm892_vm0, %v891_v0  ;;  %v705_v3 = vld [vmem:[#allocation6 + $0x10] sm:$0xff]   ;;  %v706_v4 = vld [vmem:[#allocation6 + $0x18] sm:$0xff]   ;;  %v707_v5 = vld [vmem:[#allocation6 + $0x20] sm:$0xff]   ;;  %s579_s20 = sshll.u32 %s876_s15, 7  ;;  %s257_s22 = scalar_lea.vmem [#allocation9], %s555_s5 }
  0x6e   : > { %595 = vmatpush3.bf16.msra.mxu0 %v703_v1  ;;  %v708_v6 = vld [vmem:[#allocation6 + $0x28] sm:$0xff]   ;;  %v709_v7 = vld [vmem:[#allocation6 + $0x30] sm:$0xff]   ;;  %v710_v8 = vld [vmem:[#allocation6 + $0x38] sm:$0xff]   ;;  %s432_s24 = sshll.u32 %s257_s22, 4  ;;  %s1134_s26 = scalar_lea.hbm %s1188_s3, %s579_s20  ;;  %s1136_s24 = int_to_ptr.vmem [resolvable:$true] %s432_s24 }
  0x6f   : > { %596 = vmatprep.subr.bf16.mxu0 %v891_v0  ;;  %v711_v9 = vld [vmem:[%s1117_s10] sm:$0xff]   ;;  %v568_v10 = vld [vmem:[#allocation8] ss:$0 sm:$0xff]  ;;  %s418_s15 = scalar_lea.sflag [#allocation5], %s1111_s28  ;;  %s798_s9 = scalar_lea.vmem %s1136_s24, 128 }
  0x70   : > { %p799_p8 = scmp.ne.s32.totalorder %s1136_s24, %s798_s9  ;;  %p1203_p12 = scmp.ne.s32.totalorder %s1199_s27, 0 }
  0x71   : > { %s893_s19 = smov [#allocation9]  }
  0x72   : > { %597 = vmatpush3.bf16.msra.mxu0 %v704_v2  ;;  %p800_p1 = pnand %p799_p8, %p1203_p12  ;;  %s802_s8 = sshll.u32 %s893_s19, 4  ;;  %s803_s8 = int_to_ptr.vmem [resolvable:$false] %s802_s8 }
  0x73   : > { %598 = vmatprep.subr.bf16.mxu0 %v891_v0  ;;  %s804_s4 = scalar_lea.vmem %s803_s8, 256  ;;  %p805_p3 = scmp.lt.s32.totalorder %s1136_s24, %s803_s8 }
  0x74   : > { %p801_p10 = pneg %p800_p1  ;;  %p806_p5 = scmp.lt.s32.totalorder %s804_s4, %s798_s9 }
  0x76   : > { %599 = vmatpush3.bf16.msra.mxu0 %v705_v3  ;;  %p807_p9 = por %p806_p5, %p805_p3 }
  0x77   : > { %600 = vmatprep.subr.bf16.mxu0 %v891_v0 }
  0x78   : > { %p808_p11 = pnand %p807_p9, %p801_p10 }
  0x7a   : > { %601 = vmatpush3.bf16.msra.mxu0 %v706_v4 }
  0x7b   : > { %602 = vmatprep.subr.bf16.mxu0 %v891_v0 }
  0x7e   : > { %603 = vmatpush3.bf16.msra.mxu0 %v707_v5 }
  0x7f   : > { %604 = vmatprep.subr.bf16.mxu0 %v891_v0 }
  0x82   : > { %605 = vmatpush3.bf16.msra.mxu0 %v708_v6 }
  0x83   : > { %606 = vmatprep.subr.bf16.mxu0 %v891_v0 }
  0x86   : > { %607 = vmatpush3.bf16.msra.mxu0 %v709_v7 }
  0x87   : > { %608 = vmatprep.subr.bf16.mxu0 %v891_v0 }
  0x8a   : > { %609 = vmatpush3.bf16.msra.mxu0 %v710_v8 }
  0x8d   : > { %611 = vmatmul.mubr.bf16.vlgmr.msra.gmra.mrb[0].mxu0 %v711_v9 }
 0x160   : > { %v376_v11 = vpop.f32.mrb[0].mxu0 }
 0x161   : > { %v399_v12 = vadd.f32 %v568_v10, %v376_v11  ;;  %v612_v13 = vpop.f32.mrb[1].mxu0 }
 0x162   : > { %v379_v14 = vpop.f32.mrb[2].mxu0 }
 0x163   : > { %v403_v15 = vmul.f32 0.01, %v399_v12  ;;  %v400_v16 = vadd.f32 %v568_v10, %v379_v14  ;;  %v613_v17 = vpop.f32.mrb[3].mxu0  ;;  %vm401_vm1 = vcmp.ge.f32.partialorder %v399_v12, 0.0 }
 0x165   : > { %vm402_vm2 = vcmp.ge.f32.partialorder %v400_v16, 0.0  ;;  %v404_v18 = vmul.f32 0.01, %v400_v16  ;;  %v405_v19 = vsel %vm401_vm1, %v399_v12, %v403_v15 }
 0x167   : > { %v406_v20 = vsel %vm402_vm2, %v400_v16, %v404_v18 }
 0x168   : > { %v583_v21 = vpack.c.bf16 %v406_v20, %v405_v19 }
 0x16a   : > { %584 = vst [vmem:[%s257_s22] sm:$0xff] %v583_v21  }
 0x16b   : > { %811 = shalt.err (!%p808_p11)
}
 0x16c   : > { %s812_s21 = scalar_lea.hbm %s1134_s26, 128  ;;  %s816_s5 = scalar_lea.hbm %s1188_s3, 256 }
 0x16d   : > { %p813_p0 = scmp.ne.s32.totalorder %s1134_s26, %s812_s21  ;;  %p817_p6 = scmp.lt.u32.totalorder %s1134_s26, %s1188_s3 }
 0x16e   : > { %p818_p7 = scmp.lt.u32.totalorder %s816_s5, %s812_s21  ;;  %p820_p8 = scmp.lt.u32.totalorder %s812_s21, %s1134_s26 }
 0x16f   : > { %p814_p4 = pnand %p813_p0, %p1203_p12 }
 0x170   : > { %p819_p2 = por %p818_p7, %p817_p6 }
 0x171   : > { %p815_p13 = pneg %p814_p4 }
 0x172   : > { %p821_p1 = por %p820_p8, %p819_p2 }
 0x174   : > { %p822_p10 = pnand %p821_p1, %p815_p13 }
 0x176   : > { %825 = shalt.err (!%p822_p10)
}
 0x177   : > { %s894_s20 = smov 64   ;;  %s895_s22 = smov 4  }
 0x178   : > { %624 = dma.vmem_to_hbm [thread:$0]  (%p1203_p12), %s1136_s24, 128, %s1134_s26, %s418_s15, %s894_s20, %s894_s20, %s895_s22  }
 0x179 PF: > { %s447_s11 = sand.u32 1, %s864_s12   ;;  %p1204_p3 = scmp.ne.s32.totalorder %s1196_s23, 0 }
 0x17a   : > { %p1205_p5 = scmp.ge.s32.totalorder %s884_s17, 2  ;;  %s448_s18 = scalar_lea.sflag [#allocation5], %s447_s11 }
 0x17c   : > { %p638_p9 = pnand %p1205_p5, %p1204_p3 }
 0x17e   : > { %859 = dma.done.wait (!%p638_p9), %s448_s18, 128  }
 0x17f   : > { %861 = vsyncadd (!%p638_p9), %s448_s18, 4294967168  ;;  %s20_s17 = sadd.s32 1, %s884_s17   ;;  %s1206_s12 = smov %s868_s13 }
 0x180   : > { %p17_p11 = scmp.ge.s32.totalorder %s20_s17, 4   ;;  %s1207_s13 = smov %s872_s14 }
 0x181   : > { %s1208_s14 = smov %s1062_s6  ;;  %s1209_s15 = smov %s880_s16 }
 0x182   : > { %s1210_s16 = smov %s1212_s25  ;;  %19 = sbr.rel (!%p17_p11) target bundleno = 7 (0x7), region = 95 }
 0x189   :  { %453 = vsyncpa [#allocation4], 1 }
 0x18a   :  { %455 = vsyncpa [#allocation4 + $0x1], 1 }
 0x18b   :  { %456 = vsyncpa [#allocation7], 1 }
 0x18c   :  { %457 = vsyncpa [#allocation5], 1 }
 0x18d   :  { %459 = vsyncpa [#allocation5 + $0x1], 1 }

// kernel: forward.7
= control target key start
LH: loop header
LB: loop body
LE: loop exit
PB: predicated region body
PF: predicated region fallthrough
CT: control target
= control target key end

     0   :  { %8 = vsyncpa [#allocation3], 0  ;;  %s536_s0 = inlined_call_operand.hbm [shape: bf16[16,256], index: 0, kind: input, shape index: {}]   ;;  %s537_s1 = inlined_call_operand.hbm [shape: bf16[256,5], index: 1, kind: input, shape index: {}]   ;;  %s538_s2 = inlined_call_operand.hbm [shape: f32[1,5], index: 2, kind: input, shape index: {}]   ;;  %s539_s3 = inlined_call_operand.hbm [shape: f32[16,5], index: 3, kind: output, shape index: {}]  }
   0x1   :  { %9 = vsyncpa [#allocation6], 0 }
   0x2   :  { %10 = vsyncpa [#allocation4], 0  ;;  %s447_s12 = smov [#allocation5]   ;;  %s353_s16 = scalar_lea.hbm %s537_s1, 2048 }
   0x3   :  { %s28_s13 = sshll.u32 %s447_s12, 4  ;;  %p354_p0 = scmp.ne.s32.totalorder %s537_s1, %s353_s16  ;;  %s29_s13 = int_to_ptr.vmem [resolvable:$true] %s28_s13 }
   0x4   :  { %p357_p1 = scmp.lt.u32.totalorder %s353_s16, %s537_s1 }
   0x6   :  { %p359_p2 = pnand %p357_p1, %p354_p0 }
   0x8   :  { %362 = shalt.err (!%p359_p2)
}
   0x9   :  { %s363_s21 = scalar_lea.vmem %s29_s13, 2048  ;;  %p368_p4 = scmp.lt.s32.totalorder %s29_s13, %s29_s13 }
   0xa   :  { %p364_p3 = scmp.ne.s32.totalorder %s29_s13, %s363_s21  ;;  %p369_p5 = scmp.lt.s32.totalorder %s363_s21, %s363_s21 }
   0xc   :  { %p370_p6 = por %p369_p5, %p368_p4 }
   0xe   :  { %p371_p7 = pnand %p370_p6, %p364_p3 }
  0x10   :  { %374 = shalt.err (!%p371_p7)
}
  0x11   :  { %s448_s22 = smov 64   ;;  %s449_s23 = smov 4  }
  0x12   :  { %34 = dma.hbm_to_vmem [thread:$0]  %s537_s1, 2048, %s29_s13, [#allocation6], %s448_s22, %s448_s22, %s449_s23  }
  0x13   :  { %s450_s26 = smov [#allocation2]   ;;  %s375_s30 = scalar_lea.hbm %s536_s0, 256 }
  0x14   :  { %s16_s27 = sshll.u32 %s450_s26, 4  ;;  %p376_p8 = scmp.ne.s32.totalorder %s536_s0, %s375_s30  ;;  %s17_s27 = int_to_ptr.vmem [resolvable:$true] %s16_s27 }
  0x15   :  { %p379_p9 = scmp.lt.u32.totalorder %s375_s30, %s536_s0 }
  0x17   :  { %p381_p10 = pnand %p379_p9, %p376_p8 }
  0x19   :  { %384 = shalt.err (!%p381_p10)
}
  0x1a   :  { %s385_s8 = scalar_lea.vmem %s17_s27, 256  ;;  %p390_p12 = scmp.lt.s32.totalorder %s17_s27, %s17_s27 }
  0x1b   :  { %p386_p11 = scmp.ne.s32.totalorder %s17_s27, %s385_s8  ;;  %p391_p13 = scmp.lt.s32.totalorder %s385_s8, %s385_s8 }
  0x1d   :  { %p392_p0 = por %p391_p13, %p390_p12 }
  0x1f   :  { %p393_p1 = pnand %p392_p0, %p386_p11 }
  0x21   :  { %396 = shalt.err (!%p393_p1)
}
  0x22   :  { %s451_s1 = smov 128   ;;  %s452_s9 = smov 8  }
  0x23   :  { %22 = dma.hbm_to_vmem [thread:$0]  %s536_s0, 256, %s17_s27, [#allocation3], %s451_s1, %s451_s1, %s452_s9  }
  0x24   :  { %s453_s12 = smov [#allocation7]   ;;  %s397_s16 = scalar_lea.hbm %s538_s2, 16 }
  0x25   :  { %s41_s13 = sshll.u32 %s453_s12, 4  ;;  %p398_p2 = scmp.ne.s32.totalorder %s538_s2, %s397_s16  ;;  %s42_s13 = int_to_ptr.vmem [resolvable:$true] %s41_s13 }
  0x26   :  { %p401_p3 = scmp.lt.u32.totalorder %s397_s16, %s538_s2 }
  0x28   :  { %p403_p4 = pnand %p401_p3, %p398_p2 }
  0x2a   :  { %406 = shalt.err (!%p403_p4)
}
  0x2b   :  { %s407_s21 = scalar_lea.vmem %s42_s13, 16  ;;  %s411_s0 = scalar_lea.vmem %s42_s13, 32 }
  0x2c   :  { %p408_p5 = scmp.ne.s32.totalorder %s42_s13, %s407_s21  ;;  %p412_p6 = scmp.lt.s32.totalorder %s42_s13, %s42_s13 }
  0x2d   :  { %p413_p7 = scmp.lt.s32.totalorder %s411_s0, %s407_s21 }
  0x2f   :  { %p414_p8 = por %p413_p7, %p412_p6 }
  0x31   :  { %p415_p9 = pnand %p414_p8, %p408_p5 }
  0x33   :  { %418 = shalt.err (!%p415_p9)
}
  0x34   :  { %44 = dma.hbm_to_vmem [thread:$0]  %s538_s2, 16, %s42_s13, [#allocation6]  }
  0x35   :  { %441 = dma.done.wait [#allocation3], 256  }
  0x36   :  { %442 = vsyncadd [#allocation3], 4294967040 }
  0x37   :  { %443 = dma.done.wait [#allocation6], 2064  }
  0x38   :  { %444 = vsyncadd [#allocation6], 4294965232  ;;  %v334_v0 = vld [vmem:[#allocation5 + $0x40] sm:$0xff]   ;;  %v336_v2 = vld [vmem:[#allocation5 + $0x48] sm:$0xff]   ;;  %vm59_vm0 = vcmask 39936   ;;  %v454_v18 = vmov 0.0  }
  0x39   :  { %v335_v1 = vld [vmem:[#allocation5] sm:$0xff]   ;;  %303 = vmatprep.subr.bf16.mxu0 %v334_v0  ;;  %v337_v3 = vld [vmem:[#allocation5 + $0x8] sm:$0xff]   ;;  %v338_v4 = vld [vmem:[#allocation5 + $0x50] sm:$0xff]   ;;  %60 = vst.msk [vmem:[#allocation8] sm:$0xff] %vm59_vm0, %v454_v18  ;;  %s455_s2 = smov [#allocation8]  }
  0x3a   :  { %304 = vmatpush3.bf16.msra.mxu0 %v335_v1  ;;  %v339_v5 = vld [vmem:[#allocation5 + $0x10] sm:$0xff]   ;;  %v340_v6 = vld [vmem:[#allocation5 + $0x58] sm:$0xff]   ;;  %v342_v8 = vld [vmem:[#allocation5 + $0x60] sm:$0xff]   ;;  %61 = vst.msk [vmem:[#allocation8 + $0x8] sm:$0xff] %vm59_vm0, %v454_v18  ;;  %s271_s24 = sshll.u32 %s455_s2, 4  ;;  %s272_s24 = int_to_ptr.vmem [resolvable:$true] %s271_s24 }
  0x3b   :  { %305 = vmatprep.subr.bf16.mxu0 %v336_v2  ;;  %v341_v7 = vld [vmem:[#allocation5 + $0x18] sm:$0xff]   ;;  %v343_v9 = vld [vmem:[#allocation5 + $0x20] sm:$0xff]   ;;  %v344_v10 = vld [vmem:[#allocation5 + $0x68] sm:$0xff]   ;;  %s419_s25 = scalar_lea.vmem %s272_s24, 256  ;;  %p424_p11 = scmp.lt.s32.totalorder %s272_s24, %s272_s24 }
  0x3c   :  { %v352_v11 = vld [vmem:[#allocation2 + $0x4] ss:$8 sps:$4 sm:$0xff]   ;;  %v345_v12 = vld [vmem:[#allocation5 + $0x28] sm:$0xff]   ;;  %v350_v17 = vld [vmem:[#allocation2] ss:$8 sps:$4 sm:$0xff]   ;;  %p420_p10 = scmp.ne.s32.totalorder %s272_s24, %s419_s25  ;;  %p425_p12 = scmp.lt.s32.totalorder %s419_s25, %s419_s25 }
  0x3d   :  { %236 = vmatprep.mubr.bf16.mxu0 %v352_v11  ;;  %v346_v13 = vld [vmem:[#allocation5 + $0x70] sm:$0xff]   ;;  %v348_v15 = vld [vmem:[#allocation5 + $0x78] sm:$0xff]   ;;  %v302_v29 = vld [vmem:[#allocation7] ss:$0 sm:$0xff] }
  0x3e   :  { %306 = vmatpush3.bf16.msra.mxu0 %v337_v3  ;;  %v347_v14 = vld [vmem:[#allocation5 + $0x30] sm:$0xff]   ;;  %v349_v16 = vld [vmem:[#allocation5 + $0x38] sm:$0xff]   ;;  %p426_p13 = por %p425_p12, %p424_p11 }
  0x3f   :  { %307 = vmatprep.subr.bf16.mxu0 %v338_v4 }
  0x40   :  { %v62_v20 = vld [vmem:[#allocation8] sm:$0xff]  ;;  %p427_p0 = pnand %p426_p13, %p420_p10 }
  0x41   :  { %v63_v24 = vld [vmem:[#allocation8 + $0x8] sm:$0xff] }
  0x42   :  { %308 = vmatpush3.bf16.msra.mxu0 %v339_v5 }
  0x43   :  { %309 = vmatprep.subr.bf16.mxu0 %v340_v6 }
  0x46   :  { %310 = vmatpush3.bf16.msra.mxu0 %v341_v7 }
  0x47   :  { %311 = vmatprep.subr.bf16.mxu0 %v342_v8 }
  0x4a   :  { %312 = vmatpush3.bf16.msra.mxu0 %v343_v9 }
  0x4b   :  { %313 = vmatprep.subr.bf16.mxu0 %v344_v10 }
  0x4e   :  { %314 = vmatpush3.bf16.msra.mxu0 %v345_v12 }
  0x4f   :  { %315 = vmatprep.subr.bf16.mxu0 %v346_v13 }
  0x52   :  { %316 = vmatpush3.bf16.msra.mxu0 %v347_v14 }
  0x53   :  { %317 = vmatprep.subr.bf16.mxu0 %v348_v15 }
  0x56   :  { %318 = vmatpush3.bf16.msra.mxu0 %v349_v16 }
  0x59   :  { %237 = vmatmul.mubr.bf16.vlgmr.msra.gmra.mrb[0].mxu0 %v350_v17 }
 0x12c   :  { %v319_v19 = vpop.f32.mrb[0].mxu0 }
 0x12d   :  { %v320_v21 = vpop.f32.mrb[1].mxu0 }
 0x12e   :  { %v321_v22 = vadd.f32 %v320_v21, %v319_v19  ;;  %v322_v23 = vpop.f32.mrb[2].mxu0 }
 0x12f   :  { %v323_v25 = vpop.f32.mrb[3].mxu0 }
 0x130   :  { %v245_v26 = vadd.f32 %v321_v22, %v62_v20  ;;  %v324_v27 = vadd.f32 %v323_v25, %v322_v23 }
 0x132   :  { %248 = vst.msk [vmem:[#allocation8] sm:$0xff] %vm59_vm0, %v245_v26  ;;  %v246_v28 = vadd.f32 %v324_v27, %v63_v24 }
 0x134   :  { %249 = vst.msk [vmem:[#allocation8 + $0x8] sm:$0xff] %vm59_vm0, %v246_v28 }
 0x139   :  { %v253_v30 = vld [vmem:[#allocation8] sm:$0xff] }
 0x13a   :  { %v262_v31 = vadd.f32 %v302_v29, %v253_v30 }
 0x13b   :  { %v254_v32 = vld [vmem:[#allocation8 + $0x8] sm:$0xff] }
 0x13c   :  { %v263_v33 = vadd.f32 %v302_v29, %v254_v32  ;;  %264 = vst.msk [vmem:[#allocation8] sm:$0xff] %vm59_vm0, %v262_v31 }
 0x13e   :  { %265 = vst.msk [vmem:[#allocation8 + $0x8] sm:$0xff] %vm59_vm0, %v263_v33 }
 0x13f   :  { %430 = shalt.err (!%p427_p0)
}
 0x140   :  { %s431_s28 = scalar_lea.hbm %s539_s3, 256 }
 0x141   :  { %p432_p1 = scmp.ne.s32.totalorder %s539_s3, %s431_s28  ;;  %p435_p2 = scmp.lt.u32.totalorder %s431_s28, %s539_s3 }
 0x143   :  { %p437_p3 = pnand %p435_p2, %p432_p1 }
 0x145   :  { %440 = shalt.err (!%p437_p3)
}
 0x146   :  { %277 = dma.vmem_to_hbm [thread:$0]  %s272_s24, 256, %s539_s3, [#allocation4], %s451_s1, %s451_s1, %s452_s9  }
 0x147   :  { %445 = dma.done.wait [#allocation4], 256  }
 0x148   :  { %446 = vsyncadd [#allocation4], 4294967040 }
 0x149   :  { %281 = vsyncpa [#allocation3], 1 }
 0x14a   :  { %282 = vsyncpa [#allocation6], 1 }
 0x14b   :  { %283 = vsyncpa [#allocation4], 1 }

// kernel: forward.6
= control target key start
LH: loop header
LB: loop body
LE: loop exit
PB: predicated region body
PF: predicated region fallthrough
CT: control target
= control target key end

     0   :  { %s1100_s0 = inlined_call_operand.hbm [shape: bf16[32,144], index: 0, kind: input, shape index: {}]   ;;  %s1101_s1 = inlined_call_operand.hbm [shape: bf16[144,1], index: 1, kind: input, shape index: {}]   ;;  %s1102_s2 = inlined_call_operand.<no memory space> [shape: f32[1,1], index: 2, kind: input, shape index: {}]   ;;  %s1103_s3 = inlined_call_operand.hbm [shape: f32[32,1], index: 3, kind: output, shape index: {}]  }
   0x1   :  { %v8_v0 = vstv %s1102_s2 }
   0x2   :  { %9 = vst [vmem:[#allocation2] sm:$0x1] %v8_v0 }
   0x3   :  { %10 = vsyncpa [#allocation4], 0 }
   0x4   :  { %12 = vsyncpa [#allocation4 + $0x1], 0 }
   0x5   :  { %13 = vsyncpa [#allocation7], 0 }
   0x6   :  { %14 = vsyncpa [#allocation5], 0 }
   0x7   :  { %16 = vsyncpa [#allocation5 + $0x1], 0  ;;  %s858_s14 = smov 0   ;;  %s860_s15 = smov 0  }
   0x8   :  { %s862_s16 = smov 0   ;;  %s864_s17 = smov 0  }
   0x9   :  { %s866_s18 = smov 0   ;;  %s868_s19 = smov 0  }
   0xa LB: > { %s550_s2 = sadd.s32 4294967295, %s822_s19   ;;  %s551_s20 = sadd.s32 4294967294, %s822_s19   ;;  %s822_s19 = sphi %s868_s19, %s22_s19   ;;  %s818_s18 = sphi %s866_s18, %s1127_s18   ;;  %s814_s17 = sphi %s864_s17, %s1126_s17   ;;  %s810_s16 = sphi %s862_s16, %s1125_s16   ;;  %s806_s15 = sphi %s860_s15, %s1124_s15   ;;  %s802_s14 = sphi %s858_s14, %s1123_s14  }
   0xb   : > { %p63_p0 = scmp.ne.s32.totalorder %s806_s15, %s802_s14  ;;  %p892_p1 = scmp.eq.s32.totalorder %s550_s2, 0 }
   0xc   : > { %p896_p2 = scmp.eq.s32.totalorder %s550_s2, 1  ;;  %p149_p3 = scmp.eq.s32.totalorder %s551_s20, 1 }
   0xd   : > { %s1108_s21 = scalar_select %p892_p1, 1, 0 }
   0xe   : > { %s1109_s22 = scalar_select %p896_p2, 1, 0 }
   0xf   : > { %p902_p4 = por %p892_p1, %p63_p0  ;;  %p552_p5 = scmp.ge.s32.totalorder %s822_s19, 1 }
  0x10   : > { %p907_p6 = por %p149_p3, %p63_p0  ;;  %p156_p7 = scmp.lt.s32.totalorder %s822_s19, 3 }
  0x11   : > { %s1110_s23 = scalar_select %p902_p4, 1, 0 }
  0x12   : > { %s1111_s24 = scalar_select %p907_p6, 1, 0 }
  0x13   : > { %p912_p8 = pnand %p552_p5, %p156_p7  ;;  %s824_s26 = smov [#allocation6]  }
  0x14   : > { %s172_s27 = sshll.u32 %s824_s26, 4  ;;  %s41_s29 = sadd.s32 1, %s818_s18  ;;  %s173_s27 = int_to_ptr.vmem [resolvable:$true] %s172_s27 }
  0x15   : > { %s1112_s25 = scalar_select %p912_p8, 1, 0 }
  0x16   : > { %p593_p9 = pneg %p912_p8  ;;  %s678_s5 = scalar_lea.hbm %s1101_s1, 1152 }
  0x17   : > { %p679_p12 = scmp.ne.s32.totalorder %s1101_s1, %s678_s5  ;;  %p685_p5 = scmp.lt.u32.totalorder %s678_s5, %s1101_s1 }
  0x18   : > { %p921_p11 = pnand %p593_p9, %p892_p1 }
  0x1a   : > { %p680_p13 = pneg %p921_p11 }
  0x1c   : > { %p681_p0 = pnand %p680_p13, %p679_p12 }
  0x1e   : > { %p682_p3 = pneg %p681_p0 }
  0x20   : > { %p687_p7 = pnand %p685_p5, %p682_p3 }
  0x22   : > { %690 = shalt.err (!%p687_p7)
}
  0x23   : > { %s691_s10 = scalar_lea.vmem %s173_s27, 1152  ;;  %p699_p1 = scmp.lt.s32.totalorder %s173_s27, %s173_s27 }
  0x24   : > { %p692_p9 = scmp.ne.s32.totalorder %s173_s27, %s691_s10  ;;  %p700_p4 = scmp.lt.s32.totalorder %s691_s10, %s691_s10 }
  0x26   : > { %p694_p10 = pnand %p692_p9, %p680_p13  ;;  %p701_p8 = por %p700_p4, %p699_p1 }
  0x28   : > { %p695_p6 = pneg %p694_p10 }
  0x2a   : > { %p702_p2 = pnand %p701_p8, %p695_p6 }
  0x2c   : > { %705 = shalt.err (!%p702_p2)
}
  0x2d   : > { %s825_s11 = smov 64   ;;  %s826_s12 = smov 4  }
  0x2e   : > { %596 = dma.hbm_to_vmem [thread:$0]  (!%p921_p11), %s1101_s1, 1152, %s173_s27, [#allocation7], %s825_s11, %s825_s11, %s826_s12  }
  0x2f   : > { %p43_p1 = scmp.ge.s32.totalorder %s41_s29, 2  ;;  %s50_s20 = sadd.s32 1, %s810_s16 }
  0x30   : > { %p57_p2 = scmp.ne.s32.totalorder %s810_s16, %s806_s15  ;;  %p58_p4 = scmp.eq.s32.totalorder %s822_s19, 0 }
  0x31   : > { %s1129_s29 = smov (%p43_p1, %s41_s29), 0  ;;  %p1115_p8 = scmp.ne.s32.totalorder %s1109_s22, 0 }
  0x32   : > { %p948_p6 = por %p58_p4, %p57_p2  ;;  %s45_s28 = ssub.s32 %s818_s18, %s1129_s29 }
  0x33   : > { %p954_p10 = por %p1115_p8, %p57_p2  ;;  %p606_p12 = scmp.lt.s32.totalorder %s822_s19, 2 }
  0x34   : > { %p48_p11 = scmp.eq.s32.totalorder %s45_s28, 0  ;;  %s192_s27 = sand.u32 1, %s810_s16  }
  0x35   : > { %s556_s4 = sshll.u32 %s192_s27, 4  ;;  %s583_s6 = sshll.u32 %s818_s18, 8 }
  0x36   : > { %s963_s5 = scalar_select %p48_p11, %s810_s16, %s50_s20  }
  0x37   : > { %s969_s9 = scalar_lea.hbm %s1100_s0, %s583_s6  ;;  %s196_s22 = scalar_lea.vmem [#allocation3], %s556_s4 }
  0x38   : > { %s206_s10 = sshll.u32 %s196_s22, 4  ;;  %p975_p13 = pnand %p606_p12, %p948_p6  ;;  %s971_s10 = int_to_ptr.vmem [resolvable:$true] %s206_s10 }
  0x39   : > { %s979_s12 = scalar_lea.sflag [#allocation4], %s192_s27  ;;  %s706_s13 = scalar_lea.hbm %s969_s9, 256 }
  0x3a   : > { %p707_p0 = scmp.ne.s32.totalorder %s969_s9, %s706_s13  ;;  %p708_p3 = pneg %p975_p13 }
  0x3b   : > { %s711_s26 = scalar_lea.hbm %s1100_s0, 512  ;;  %p712_p9 = scmp.lt.u32.totalorder %s969_s9, %s1100_s0 }
  0x3c   : > { %p709_p5 = pnand %p708_p3, %p707_p0  ;;  %p713_p1 = scmp.lt.u32.totalorder %s711_s26, %s706_s13 }
  0x3d   : > { %p715_p4 = scmp.lt.u32.totalorder %s706_s13, %s969_s9 }
  0x3e   : > { %p710_p7 = pneg %p709_p5  ;;  %p714_p2 = por %p713_p1, %p712_p9 }
  0x40   : > { %p716_p6 = por %p715_p4, %p714_p2 }
  0x42   : > { %p717_p8 = pnand %p716_p6, %p710_p7 }
  0x44   : > { %720 = shalt.err (!%p717_p8)
}
  0x45   : > { %s721_s27 = scalar_lea.vmem %s971_s10, 256  ;;  %s827_s6 = smov [#allocation3]  }
  0x46   : > { %p722_p12 = scmp.ne.s32.totalorder %s971_s10, %s721_s27  ;;  %s726_s7 = sshll.u32 %s827_s6, 4  ;;  %s727_s7 = int_to_ptr.vmem [resolvable:$false] %s726_s7 }
  0x47   : > { %s728_s8 = scalar_lea.vmem %s727_s7, 512  ;;  %p729_p5 = scmp.lt.s32.totalorder %s971_s10, %s727_s7 }
  0x48   : > { %p724_p11 = pnand %p722_p12, %p708_p3  ;;  %p730_p9 = scmp.lt.s32.totalorder %s728_s8, %s721_s27 }
  0x4a   : > { %p725_p0 = pneg %p724_p11  ;;  %p731_p1 = por %p730_p9, %p729_p5 }
  0x4c   : > { %p732_p2 = pnand %p731_p1, %p725_p0 }
  0x4e   : > { %735 = shalt.err (!%p732_p2)
}
  0x4f   : > { %s828_s22 = smov 128   ;;  %s829_s13 = smov 8  }
  0x50   : > { %600 = dma.hbm_to_vmem [thread:$0]  (!%p975_p13), %s969_s9, 256, %s971_s10, %s979_s12, %s828_s22, %s828_s22, %s829_s13  }
  0x51   : > { %p1118_p3 = scmp.ne.s32.totalorder %s1112_s25, 0 }
  0x52   : > { %s1010_s2 = sand.u32 (!%p1118_p3), 1, %s806_s15   ;;  %p1119_p7 = scmp.ne.s32.totalorder (!%p1118_p3), %s1110_s23, 0 }
  0x53   : > { %218 = sbr.rel (%p1118_p3) target bundleno = 372 (0x174), region = 32  ;;  %s561_s20 = sshll.u32 (!%p1118_p3), %s1010_s2, 4 }
  0x54   : > { %s221_s26 = scalar_lea.sflag (!%p1118_p3), [#allocation4], %s1010_s2  ;;  %s1014_s28 = scalar_lea.vmem (!%p1118_p3), [#allocation3], %s561_s20 }
  0x5a   : > { %789 = dma.done.wait (%p1119_p7), %s221_s26, 256  }
  0x5b   : > { %791 = vsyncadd (%p1119_p7), %s221_s26, 4294967040  ;;  %p1120_p13 = scmp.ne.s32.totalorder %s1108_s21, 0 }
  0x5d   : > { %793 = dma.done.wait (%p1120_p13), [#allocation7], 1152  }
  0x5e   : > { %795 = vsyncadd (%p1120_p13), [#allocation7], 4294966144  ;;  %vm266_vm0 = vcmask 7168   ;;  %v830_v1 = vmov 0   ;;  %s1024_s25 = scalar_lea.vmem [#allocation8], %s561_s20  ;;  %v831_v2 = vmov 0.0  }
  0x5f   : > { %358 = vmatprep.subr.bf16.mxu0 %v830_v1  ;;  %267 = vst.msk [vmem:[%s1024_s25] sm:$0xff] %vm266_vm0, %v831_v2  ;;  %268 = vst.msk [vmem:[%s1024_s25 + $0x8] sm:$0xff] %vm266_vm0, %v831_v2  ;;  %v666_v3 = vld [vmem:[#allocation6] sm:$0xff]   ;;  %v667_v4 = vld [vmem:[#allocation6 + $0x8] sm:$0xff]   ;;  %vm354_vm1 = vcmask 130048   ;;  %s584_s21 = sshll.u32 %s814_s17, 8 }
  0x60   : > { %359 = vmatpush1.bf16.msra.mxu0 %v666_v3  ;;  %v668_v5 = vld [vmem:[#allocation6 + $0x10] sm:$0xff]   ;;  %v669_v6 = vld [vmem:[#allocation6 + $0x18] sm:$0xff]   ;;  %v670_v8 = vld [vmem:[#allocation6 + $0x20] sm:$0xff]   ;;  %s435_s23 = sshll.u32 %s1024_s25, 4  ;;  %s1045_s11 = scalar_lea.hbm %s1103_s3, %s584_s21  ;;  %s1047_s23 = int_to_ptr.vmem [resolvable:$true] %s435_s23 }
  0x61   : > { %360 = vmatprep.subr.bf16.mxu0 %v830_v1  ;;  %v677_v7 = vld [vmem:[%s1014_s28 + $0x4] ss:$8 sps:$4 sm:$0xff]   ;;  %v675_v13 = vld [vmem:[%s1014_s28] ss:$8 sps:$4 sm:$0xff]   ;;  %s421_s17 = scalar_lea.sflag [#allocation5], %s1010_s2  ;;  %s736_s12 = scalar_lea.vmem %s1047_s23, 256 }
  0x62   : > { %575 = vmatprep.mubr.msk.bf16.mxu0 %vm354_vm1, %v677_v7  ;;  %v671_v9 = vld [vmem:[#allocation6 + $0x28] sm:$0xff]   ;;  %v672_v10 = vld [vmem:[#allocation6 + $0x30] sm:$0xff]   ;;  %v673_v11 = vld [vmem:[#allocation6 + $0x38] sm:$0xff]   ;;  %p737_p4 = scmp.ne.s32.totalorder %s1047_s23, %s736_s12  ;;  %s832_s4 = smov [#allocation8]  }
  0x63   : > { %v674_v12 = vld [vmem:[#allocation6 + $0x40] sm:$0xff]   ;;  %v576_v22 = vld [vmem:[#allocation2] ss:$0 sm:$0xff]  ;;  %s740_s27 = sshll.u32 %s832_s4, 4  ;;  %s741_s27 = int_to_ptr.vmem [resolvable:$false] %s740_s27 }
  0x64   : > { %361 = vmatpush1.bf16.msra.mxu0 %v667_v4  ;;  %p738_p6 = pnand %p737_p4, %p954_p10  ;;  %s742_s6 = scalar_lea.vmem %s741_s27, 512 }
  0x65   : > { %362 = vmatprep.subr.bf16.mxu0 %v830_v1  ;;  %p743_p12 = scmp.lt.s32.totalorder %s1047_s23, %s741_s27  ;;  %p744_p11 = scmp.lt.s32.totalorder %s742_s6, %s736_s12 }
  0x66   : > { %v269_v14 = vld [vmem:[%s1024_s25] sm:$0xff]  ;;  %v270_v16 = vld [vmem:[%s1024_s25 + $0x8] sm:$0xff]  ;;  %p739_p8 = pneg %p738_p6 }
  0x67   : > { %p745_p0 = por %p744_p11, %p743_p12 }
  0x68   : > { %363 = vmatpush1.bf16.msra.mxu0 %v668_v5 }
  0x69   : > { %364 = vmatprep.subr.bf16.mxu0 %v830_v1  ;;  %p746_p5 = pnand %p745_p0, %p739_p8 }
  0x6c   : > { %365 = vmatpush1.bf16.msra.mxu0 %v669_v6 }
  0x6d   : > { %366 = vmatprep.subr.bf16.mxu0 %v830_v1 }
  0x70   : > { %367 = vmatpush1.bf16.msra.mxu0 %v670_v8 }
  0x71   : > { %368 = vmatprep.subr.bf16.mxu0 %v830_v1 }
  0x74   : > { %369 = vmatpush1.bf16.msra.mxu0 %v671_v9 }
  0x75   : > { %370 = vmatprep.subr.bf16.mxu0 %v830_v1 }
  0x78   : > { %371 = vmatpush1.bf16.msra.mxu0 %v672_v10 }
  0x79   : > { %372 = vmatprep.subr.bf16.mxu0 %v830_v1 }
  0x7c   : > { %373 = vmatpush1.bf16.msra.mxu0 %v673_v11 }
  0x7d   : > { %374 = vmatprep.subr.bf16.mxu0 %v830_v1 }
  0x80   : > { %375 = vmatpush1.bf16.msra.mxu0 %v674_v12 }
  0x83   : > { %391 = vmatmul.mubr.bf16.vlgmr.msra.gmra.mrb[0].mxu0 %v675_v13 }
 0x156   : > { %v392_v15 = vpop.f32.mrb[0].mxu0 }
 0x157   : > { %v399_v17 = vadd.f32 %v392_v15, %v269_v14  ;;  %v394_v18 = vpop.f32.mrb[1].mxu0 }
 0x158   : > { %v395_v19 = vpop.f32.mrb[2].mxu0 }
 0x159   : > { %402 = vst.msk [vmem:[%s1024_s25] sm:$0xff] %vm266_vm0, %v399_v17  ;;  %v400_v20 = vadd.f32 %v395_v19, %v270_v16  ;;  %v397_v21 = vpop.f32.mrb[3].mxu0 }
 0x15b   : > { %403 = vst.msk [vmem:[%s1024_s25 + $0x8] sm:$0xff] %vm266_vm0, %v400_v20 }
 0x160   : > { %v407_v23 = vld [vmem:[%s1024_s25] sm:$0xff] }
 0x161   : > { %v416_v24 = vadd.f32 %v576_v22, %v407_v23 }
 0x162   : > { %v408_v25 = vld [vmem:[%s1024_s25 + $0x8] sm:$0xff] }
 0x163   : > { %v417_v26 = vadd.f32 %v576_v22, %v408_v25  ;;  %418 = vst.msk [vmem:[%s1024_s25] sm:$0xff] %vm266_vm0, %v416_v24 }
 0x165   : > { %419 = vst.msk [vmem:[%s1024_s25 + $0x8] sm:$0xff] %vm266_vm0, %v417_v26 }
 0x166   : > { %749 = shalt.err (!%p746_p5)
}
 0x167   : > { %s750_s7 = scalar_lea.hbm %s1045_s11, 256  ;;  %s754_s13 = scalar_lea.hbm %s1103_s3, 512 }
 0x168   : > { %p751_p9 = scmp.ne.s32.totalorder %s1045_s11, %s750_s7  ;;  %p755_p3 = scmp.lt.u32.totalorder %s1045_s11, %s1103_s3 }
 0x169   : > { %p756_p7 = scmp.lt.u32.totalorder %s754_s13, %s750_s7  ;;  %p758_p4 = scmp.lt.u32.totalorder %s750_s7, %s1045_s11 }
 0x16a   : > { %p752_p1 = pnand %p751_p9, %p954_p10 }
 0x16b   : > { %p757_p13 = por %p756_p7, %p755_p3 }
 0x16c   : > { %p753_p2 = pneg %p752_p1 }
 0x16d   : > { %p759_p6 = por %p758_p4, %p757_p13 }
 0x16f   : > { %p760_p8 = pnand %p759_p6, %p753_p2 }
 0x171   : > { %763 = shalt.err (!%p760_p8)
}
 0x172   : > { %s833_s28 = smov 128   ;;  %s834_s25 = smov 8  }
 0x173   : > { %591 = dma.vmem_to_hbm [thread:$0]  (%p954_p10), %s1047_s23, 256, %s1045_s11, %s421_s17, %s833_s28, %s833_s28, %s834_s25  }
 0x174 PF: > { %s450_s21 = sand.u32 1, %s802_s14   ;;  %p1121_p12 = scmp.ne.s32.totalorder %s1111_s24, 0 }
 0x175   : > { %p1122_p11 = scmp.ge.s32.totalorder %s822_s19, 2  ;;  %s451_s9 = scalar_lea.sflag [#allocation5], %s450_s21 }
 0x177   : > { %p602_p0 = pnand %p1122_p11, %p1121_p12 }
 0x179   : > { %797 = dma.done.wait (!%p602_p0), %s451_s9, 256  }
 0x17a   : > { %799 = vsyncadd (!%p602_p0), %s451_s9, 4294967040  ;;  %s22_s19 = sadd.s32 1, %s822_s19   ;;  %s1123_s14 = smov %s806_s15 }
 0x17b   : > { %p19_p5 = scmp.ge.s32.totalorder %s22_s19, 4   ;;  %s1124_s15 = smov %s810_s16 }
 0x17c   : > { %s1125_s16 = smov %s963_s5  ;;  %s1126_s17 = smov %s818_s18 }
 0x17d   : > { %s1127_s18 = smov %s1129_s29  ;;  %21 = sbr.rel (!%p19_p5) target bundleno = 10 (0xa), region = 93 }
 0x184   :  { %456 = vsyncpa [#allocation4], 1 }
 0x185   :  { %458 = vsyncpa [#allocation4 + $0x1], 1 }
 0x186   :  { %459 = vsyncpa [#allocation7], 1 }
 0x187   :  { %460 = vsyncpa [#allocation5], 1 }
 0x188   :  { %462 = vsyncpa [#allocation5 + $0x1], 1 }

</bundles_post_ra>
